<compile_context>
chip_gen: v6e
topology: v6e:2x2x1
jax: 0.10.0
libtpu: 0.0.40
codegen_flags: <defaults>
</compile_context>

<pallas_src>
import functools

import jax
import jax.numpy as jnp
from jax.experimental import pallas as pl
from jax.experimental.pallas import tpu as pltpu


_TAPS3 = tuple((dy, dx) for dy in (-1, 0, 1) for dx in (-1, 0, 1))


# ----------------------------- fused bottleneck kernel --------------------------------
def _bottleneck_kernel(x_ref, w1_ref, w2_ref, w3_ref,
                       s1_ref, b1_ref, s2_ref, b2_ref, s3_ref, b3_ref,
                       wca1_ref, wca2_ref, m2_ref, tsa_ref,
                       o_ref, *, H, W, planes, nb):
    f32 = jnp.float32
    HW = H * W
    L = nb * HW
    C4 = 4 * planes

    x = x_ref[...]                                            # (C4, L) -- input & residual

    # ---- conv1 (1x1) + BN + ReLU -> (planes, L)
    out1 = jnp.dot(w1_ref[...], x, preferred_element_type=f32)
    out1 = jnp.maximum(out1 * s1_ref[...] + b1_ref[...], 0.0)

    # ---- conv2 (3x3, pad=1) + BN + ReLU: in-vreg im2col -> ONE matmul (K = 9*planes)
    pieces = []
    for k, (dy, dx) in enumerate(_TAPS3):
        off = dy * W + dx
        s = off % L
        if s == 0:
            pieces.append(out1)                               # center tap: mask == 1
        else:
            # rot[p] = out1[(p + off) mod L]; mask zeroes every wrapped / out-of-image
            # source (including crossings between packed batch elements).
            rot = jnp.concatenate([out1[:, s:], out1[:, :s]], axis=1)
            pieces.append(rot * m2_ref[k:k + 1, :])
    im2col = jnp.concatenate(pieces, axis=0)                  # (9*planes, L)
    out2 = jnp.dot(w2_ref[...], im2col, preferred_element_type=f32)
    out2 = jnp.maximum(out2 * s2_ref[...] + b2_ref[...], 0.0)

    # ---- conv3 (1x1) + BN -> (C4, L)
    out3 = jnp.dot(w3_ref[...], out2, preferred_element_type=f32)
    out3 = out3 * s3_ref[...] + b3_ref[...]

    # ---- channel attention: per-element pooling, fc1 as a single stacked-RHS matmul
    avg_cols, max_cols = [], []
    for b in range(nb):
        seg = out3[:, b * HW:(b + 1) * HW]                    # lane-aligned static slice
        avg_cols.append(jnp.mean(seg, axis=1, keepdims=True))
        max_cols.append(jnp.max(seg, axis=1, keepdims=True))
    pooled = jnp.concatenate(avg_cols + max_cols, axis=1)     # (C4, 2*nb)
    h = jnp.maximum(jnp.dot(wca1_ref[...], pooled, preferred_element_type=f32), 0.0)
    h = h[:, :nb] + h[:, nb:]                                 # (hid_p, nb)
    att_c = jax.nn.sigmoid(jnp.dot(wca2_ref[...], h, preferred_element_type=f32))  # (C4, nb)
    if nb == 1:
        out4 = out3 * att_c
    else:
        att_full = jnp.concatenate(
            [jnp.broadcast_to(att_c[:, b:b + 1], (C4, HW)) for b in range(nb)], axis=1)
        out4 = out3 * att_full

    # ---- spatial attention: [avg | max] (1, 2L) @ Toeplitz (2L, L)  (one MXU matmul)
    avg_s = jnp.mean(out4, axis=0, keepdims=True)             # (1, L)
    max_s = jnp.max(out4, axis=0, keepdims=True)              # (1, L)
    am = jnp.concatenate([avg_s, max_s], axis=1)              # (1, 2L)
    att_s = jax.nn.sigmoid(jnp.dot(am, tsa_ref[...], preferred_element_type=f32))  # (1, L)

    # ---- attention scale + residual + ReLU
    o_ref[...] = jnp.maximum(out4 * att_s + x, 0.0)


# ----------------------------- parameters (PyTorch conventions) ------------------------
def init_params(key, inplanes, planes):
    ks = jax.random.split(key, 9)
    C4 = planes * 4
    hid = C4 // 16
    p = {}
    p['w_conv1'] = 0.1 * jax.random.normal(ks[0], (planes, inplanes, 1, 1), jnp.float32)
    p['w_conv2'] = 0.1 * jax.random.normal(ks[1], (planes, planes, 3, 3), jnp.float32)
    p['w_conv3'] = 0.1 * jax.random.normal(ks[2], (C4, planes, 1, 1), jnp.float32)
    p['w_fc1'] = 0.1 * jax.random.normal(ks[3], (hid, C4, 1, 1), jnp.float32)
    p['w_fc2'] = 0.1 * jax.random.normal(ks[4], (C4, hid, 1, 1), jnp.float32)
    p['w_sa'] = 0.1 * jax.random.normal(ks[5], (1, 2, 7, 7), jnp.float32)

    def bn_params(c, kk):
        gamma = 1.0 + 0.1 * jax.random.normal(kk, (c,), jnp.float32)
        beta = 0.05 * jnp.arange(c, dtype=jnp.float32)
        mean = 0.01 * jnp.arange(c, dtype=jnp.float32)
        var = 1.0 + 0.1 * jnp.abs(jax.random.normal(kk, (c,), jnp.float32))
        return (gamma, beta, mean, var)

    p['bn1'] = bn_params(planes, ks[6])
    p['bn2'] = bn_params(planes, ks[7])
    p['bn3'] = bn_params(C4, ks[8])
    return p


def _fold_bn(bn, eps=1e-5):
    g, b, m, v = bn
    scale = g / jnp.sqrt(v + eps)
    bias = b - m * scale
    return scale.reshape(-1, 1), bias.reshape(-1, 1)


def _conv2_tap_masks(H, W, nb):
    """Per-tap source-validity masks on the packed (nb*HW,) lane axis (f32 0/1)."""
    HW = H * W
    L = nb * HW
    pos = jnp.arange(L, dtype=jnp.int32)
    r = (pos // W) % H
    c = pos % W
    rows = []
    for dy, dx in _TAPS3:
        valid = (r + dy >= 0) & (r + dy < H) & (c + dx >= 0) & (c + dx < W)
        rows.append(valid.astype(jnp.float32))
    return jnp.stack(rows, axis=0)                            # (9, L)


def _sa_toeplitz(w_sa, H, W, nb):
    """Block-diagonal Toeplitz (2L, L) embedding the 7x7 SA conv + zero padding.

    Row block [0, L)  multiplies the channel-avg map, [L, 2L) the channel-max map.
    """
    HW = H * W
    L = nb * HW
    pos = jnp.arange(L, dtype=jnp.int32)
    r = (pos // W) % H
    c = pos % W
    T = jnp.zeros((2 * L, L), jnp.float32)
    for dy in range(-3, 4):
        for dx in range(-3, 4):
            valid = (r + dy >= 0) & (r + dy < H) & (c + dx >= 0) & (c + dx < W)
            q = jnp.where(valid, pos + dy * W + dx, 0)
            T = T.at[q, pos].add(jnp.where(valid, w_sa[0, dy + 3, dx + 3], 0.0))
            T = T.at[L + q, pos].add(jnp.where(valid, w_sa[1, dy + 3, dx + 3], 0.0))
    return T


# ----------------------------- forward pass (single fused pallas_call) -----------------
def bottleneck_pallas(x_nchw, p):
    N, Cin, H, W = x_nchw.shape
    planes = p['w_conv1'].shape[0]
    C4 = planes * 4
    assert Cin == C4, "no-downsample Bottleneck requires inplanes == planes*4"
    HW = H * W

    # Batch packing: NB elements share the lane axis (L = NB*HW) per grid step; keep at
    # least 2 grid steps so both v7x TensorCores get work ("parallel" grid axis).
    NB = 2 if (N % 2 == 0 and N >= 4) else 1
    assert N % NB == 0
    steps = N // NB
    L = NB * HW

    # (N, C, H, W) -> (C, N*HW): channels on sublanes, batch*spatial lane-dense.
    x = jnp.transpose(x_nchw.reshape(N, Cin, HW).astype(jnp.float32),
                      (1, 0, 2)).reshape(Cin, N * HW)

    # weights in kernel-friendly layouts
    w1 = p['w_conv1'][:, :, 0, 0]                                           # (planes, C4)
    w2cat = jnp.concatenate(
        [p['w_conv2'][:, :, dy + 1, dx + 1] for dy, dx in _TAPS3], axis=1)  # (planes, 9*planes)
    w3 = p['w_conv3'][:, :, 0, 0]                                           # (C4, planes)
    hid = p['w_fc1'].shape[0]
    hid_p = max(8, hid)                        # pad MLP hidden dim so matmul K >= 8
    wca1 = jnp.zeros((hid_p, C4), jnp.float32).at[:hid, :].set(p['w_fc1'][:, :, 0, 0])
    wca2 = jnp.zeros((C4, hid_p), jnp.float32).at[:, :hid].set(p['w_fc2'][:, :, 0, 0])

    s1, b1 = _fold_bn(p['bn1'])
    s2, b2 = _fold_bn(p['bn2'])
    s3, b3 = _fold_bn(p['bn3'])

    m2 = _conv2_tap_masks(H, W, NB)                                         # (9, L)
    tsa = _sa_toeplitz(p['w_sa'][0], H, W, NB)                              # (2L, L)

    kernel = functools.partial(_bottleneck_kernel, H=H, W=W, planes=planes, nb=NB)
    out = pl.pallas_call(
        kernel,
        out_shape=jax.ShapeDtypeStruct((C4, N * HW), jnp.float32),
        grid=(steps,),
        in_specs=[
            pl.BlockSpec((C4, L), lambda b: (0, b)),                 # x / residual
            pl.BlockSpec((planes, C4), lambda b: (0, 0)),            # w1
            pl.BlockSpec((planes, 9 * planes), lambda b: (0, 0)),    # w2 (im2col-packed)
            pl.BlockSpec((C4, planes), lambda b: (0, 0)),            # w3
            pl.BlockSpec((planes, 1), lambda b: (0, 0)),             # bn1 scale
            pl.BlockSpec((planes, 1), lambda b: (0, 0)),             # bn1 bias
            pl.BlockSpec((planes, 1), lambda b: (0, 0)),             # bn2 scale
            pl.BlockSpec((planes, 1), lambda b: (0, 0)),             # bn2 bias
            pl.BlockSpec((C4, 1), lambda b: (0, 0)),                 # bn3 scale
            pl.BlockSpec((C4, 1), lambda b: (0, 0)),                 # bn3 bias
            pl.BlockSpec((hid_p, C4), lambda b: (0, 0)),             # ca fc1
            pl.BlockSpec((C4, hid_p), lambda b: (0, 0)),             # ca fc2
            pl.BlockSpec((9, L), lambda b: (0, 0)),                  # conv2 tap masks
            pl.BlockSpec((2 * L, L), lambda b: (0, 0)),              # SA Toeplitz
        ],
        out_specs=pl.BlockSpec((C4, L), lambda b: (0, b)),
        compiler_params=pltpu.CompilerParams(
            dimension_semantics=("parallel",)),
    )(x, w1, w2cat, w3, s1, b1, s2, b2, s3, b3, wca1, wca2, m2, tsa)

    return jnp.transpose(out.reshape(C4, N, HW), (1, 0, 2)).reshape(N, C4, H, W)


# ----------------------------- pure-JAX reference (PyTorch NCHW semantics) -------------
def _tconv(x, w, pad):
    return jax.lax.conv_general_dilated(
        x, w, window_strides=(1, 1), padding=[(pad, pad), (pad, pad)],
        dimension_numbers=('NCHW', 'OIHW', 'NCHW'))


def _bn(x, bn, eps=1e-5):
    g, b, m, v = (t.reshape(1, -1, 1, 1) for t in bn)
    return (x - m) / jnp.sqrt(v + eps) * g + b


def bottleneck_ref(x, p):
    relu = lambda t: jnp.maximum(t, 0.0)
    out = relu(_bn(_tconv(x, p['w_conv1'], 0), p['bn1']))
    out = relu(_bn(_tconv(out, p['w_conv2'], 1), p['bn2']))
    out = _bn(_tconv(out, p['w_conv3'], 0), p['bn3'])
    avg = jnp.mean(out, axis=(2, 3), keepdims=True)
    mx = jnp.max(out, axis=(2, 3), keepdims=True)
    mlp = lambda v: _tconv(relu(_tconv(v, p['w_fc1'], 0)), p['w_fc2'], 0)
    ca = jax.nn.sigmoid(mlp(avg) + mlp(mx))
    out = ca * out
    a = jnp.mean(out, axis=1, keepdims=True)
    m = jnp.max(out, axis=1, keepdims=True)
    sa = jax.nn.sigmoid(_tconv(jnp.concatenate([a, m], axis=1), p['w_sa'], 3))
    out = sa * out
    return relu(out + x)


if __name__ == "__main__":
    key = jax.random.PRNGKey(0)
    kx, kp = jax.random.split(key)
    inplanes, planes = 16, 4          # inplanes == planes*4 (no downsample), stride=1
    N, H, W = 2, 16, 16
    x = jax.random.normal(kx, (N, inplanes, H, W), jnp.float32)
    params = init_params(kp, inplanes, planes)

    out = jax.block_until_ready(bottleneck_pallas(x, params))
    ref = jax.block_until_ready(bottleneck_ref(x, params))

    assert out.shape == (N, planes * 4, H, W)
    err = float(jnp.max(jnp.abs(out - ref)))
    assert jnp.allclose(out, ref, rtol=1e-4, atol=1e-4), err
    print("KERNEL_OK")
</pallas_src>

<mosaic_0001>
module attributes {stable_mosaic.version = 11 : i64} {
  func.func @_bottleneck_kernel(%arg0: i32, %arg1: memref<16x256xf32, #tpu.memory_space<vmem>>, %arg2: memref<4x16xf32, #tpu.memory_space<vmem>>, %arg3: memref<4x36xf32, #tpu.memory_space<vmem>>, %arg4: memref<16x4xf32, #tpu.memory_space<vmem>>, %arg5: memref<4x1xf32, #tpu.memory_space<vmem>>, %arg6: memref<4x1xf32, #tpu.memory_space<vmem>>, %arg7: memref<4x1xf32, #tpu.memory_space<vmem>>, %arg8: memref<4x1xf32, #tpu.memory_space<vmem>>, %arg9: memref<16x1xf32, #tpu.memory_space<vmem>>, %arg10: memref<16x1xf32, #tpu.memory_space<vmem>>, %arg11: memref<8x16xf32, #tpu.memory_space<vmem>>, %arg12: memref<16x8xf32, #tpu.memory_space<vmem>>, %arg13: memref<9x256xf32, #tpu.memory_space<vmem>>, %arg14: memref<512x256xf32, #tpu.memory_space<vmem>>, %arg15: memref<16x256xf32, #tpu.memory_space<vmem>>) attributes {dimension_semantics = [#tpu.dimension_semantics<parallel>], iteration_bounds = array<i64: 2>, scalar_prefetch = 0 : i64, scratch_operands = 0 : i64, tpu.core_type = #tpu.core_type<tc>, window_params = [{transform_indices = @transform_0, window_bounds = array<i64: 16, 256>}, {pipeline_mode = #tpu.pipeline_mode<synchronous>, transform_indices = @transform_1, window_bounds = array<i64: 4, 16>}, {pipeline_mode = #tpu.pipeline_mode<synchronous>, transform_indices = @transform_2, window_bounds = array<i64: 4, 36>}, {pipeline_mode = #tpu.pipeline_mode<synchronous>, transform_indices = @transform_3, window_bounds = array<i64: 16, 4>}, {pipeline_mode = #tpu.pipeline_mode<synchronous>, transform_indices = @transform_4, window_bounds = array<i64: 4, 1>}, {pipeline_mode = #tpu.pipeline_mode<synchronous>, transform_indices = @transform_5, window_bounds = array<i64: 4, 1>}, {pipeline_mode = #tpu.pipeline_mode<synchronous>, transform_indices = @transform_6, window_bounds = array<i64: 4, 1>}, {pipeline_mode = #tpu.pipeline_mode<synchronous>, transform_indices = @transform_7, window_bounds = array<i64: 4, 1>}, {pipeline_mode = #tpu.pipeline_mode<synchronous>, transform_indices = @transform_8, window_bounds = array<i64: 16, 1>}, {pipeline_mode = #tpu.pipeline_mode<synchronous>, transform_indices = @transform_9, window_bounds = array<i64: 16, 1>}, {pipeline_mode = #tpu.pipeline_mode<synchronous>, transform_indices = @transform_10, window_bounds = array<i64: 8, 16>}, {pipeline_mode = #tpu.pipeline_mode<synchronous>, transform_indices = @transform_11, window_bounds = array<i64: 16, 8>}, {pipeline_mode = #tpu.pipeline_mode<synchronous>, transform_indices = @transform_12, window_bounds = array<i64: 9, 256>}, {pipeline_mode = #tpu.pipeline_mode<synchronous>, transform_indices = @transform_13, window_bounds = array<i64: 512, 256>}, {transform_indices = @transform_14, window_bounds = array<i64: 16, 256>}]} {
    %c0 = arith.constant 0 : index
    %c0_0 = arith.constant 0 : index
    %0 = vector.load %arg1[%c0, %c0_0] : memref<16x256xf32, #tpu.memory_space<vmem>>, vector<16x256xf32>
    %c0_1 = arith.constant 0 : index
    %c0_2 = arith.constant 0 : index
    %1 = vector.load %arg2[%c0_1, %c0_2] : memref<4x16xf32, #tpu.memory_space<vmem>>, vector<4x16xf32>
    %cst = arith.constant dense<0.000000e+00> : vector<4x256xf32>
    %2 = tpu.matmul %1, %0, %cst {dimension_numbers = #tpu.dot_dimension_numbers<[1], [0], [0], [1], [0, 0, 1, 1], [], []>} : vector<4x16xf32>, vector<16x256xf32>, vector<4x256xf32> -> vector<4x256xf32>
    %c0_3 = arith.constant 0 : index
    %c0_4 = arith.constant 0 : index
    %3 = vector.load %arg5[%c0_3, %c0_4] : memref<4x1xf32, #tpu.memory_space<vmem>>, vector<4x1xf32>
    %4 = vector.broadcast %3 : vector<4x1xf32> to vector<4x256xf32>
    %5 = arith.mulf %2, %4 : vector<4x256xf32>
    %c0_5 = arith.constant 0 : index
    %c0_6 = arith.constant 0 : index
    %6 = vector.load %arg6[%c0_5, %c0_6] : memref<4x1xf32, #tpu.memory_space<vmem>>, vector<4x1xf32>
    %7 = vector.broadcast %6 : vector<4x1xf32> to vector<4x256xf32>
    %8 = arith.addf %5, %7 : vector<4x256xf32>
    %cst_7 = arith.constant 0.000000e+00 : f32
    %9 = vector.broadcast %cst_7 : f32 to vector<4x256xf32>
    %10 = arith.maximumf %8, %9 : vector<4x256xf32>
    %11 = vector.extract_strided_slice %10 {offsets = [0, 239], sizes = [4, 17], strides = [1, 1]} : vector<4x256xf32> to vector<4x17xf32>
    %12 = vector.extract_strided_slice %10 {offsets = [0, 0], sizes = [4, 239], strides = [1, 1]} : vector<4x256xf32> to vector<4x239xf32>
    %13 = tpu.concatenate %11, %12 in 1 : vector<4x17xf32>, vector<4x239xf32> -> vector<4x256xf32>
    %c0_8 = arith.constant 0 : index
    %c0_9 = arith.constant 0 : index
    %14 = vector.load %arg13[%c0_8, %c0_9] : memref<9x256xf32, #tpu.memory_space<vmem>>, vector<1x256xf32>
    %15 = vector.broadcast %14 : vector<1x256xf32> to vector<4x256xf32>
    %16 = arith.mulf %13, %15 : vector<4x256xf32>
    %17 = vector.extract_strided_slice %10 {offsets = [0, 240], sizes = [4, 16], strides = [1, 1]} : vector<4x256xf32> to vector<4x16xf32>
    %18 = vector.extract_strided_slice %10 {offsets = [0, 0], sizes = [4, 240], strides = [1, 1]} : vector<4x256xf32> to vector<4x240xf32>
    %19 = tpu.concatenate %17, %18 in 1 : vector<4x16xf32>, vector<4x240xf32> -> vector<4x256xf32>
    %c1 = arith.constant 1 : index
    %c0_10 = arith.constant 0 : index
    %20 = vector.load %arg13[%c1, %c0_10] : memref<9x256xf32, #tpu.memory_space<vmem>>, vector<1x256xf32>
    %21 = vector.broadcast %20 : vector<1x256xf32> to vector<4x256xf32>
    %22 = arith.mulf %19, %21 : vector<4x256xf32>
    %23 = vector.extract_strided_slice %10 {offsets = [0, 241], sizes = [4, 15], strides = [1, 1]} : vector<4x256xf32> to vector<4x15xf32>
    %24 = vector.extract_strided_slice %10 {offsets = [0, 0], sizes = [4, 241], strides = [1, 1]} : vector<4x256xf32> to vector<4x241xf32>
    %25 = tpu.concatenate %23, %24 in 1 : vector<4x15xf32>, vector<4x241xf32> -> vector<4x256xf32>
    %c2 = arith.constant 2 : index
    %c0_11 = arith.constant 0 : index
    %26 = vector.load %arg13[%c2, %c0_11] : memref<9x256xf32, #tpu.memory_space<vmem>>, vector<1x256xf32>
    %27 = vector.broadcast %26 : vector<1x256xf32> to vector<4x256xf32>
    %28 = arith.mulf %25, %27 : vector<4x256xf32>
    %29 = vector.extract_strided_slice %10 {offsets = [0, 255], sizes = [4, 1], strides = [1, 1]} : vector<4x256xf32> to vector<4x1xf32>
    %30 = vector.extract_strided_slice %10 {offsets = [0, 0], sizes = [4, 255], strides = [1, 1]} : vector<4x256xf32> to vector<4x255xf32>
    %31 = tpu.concatenate %29, %30 in 1 : vector<4x1xf32>, vector<4x255xf32> -> vector<4x256xf32>
    %c3 = arith.constant 3 : index
    %c0_12 = arith.constant 0 : index
    %32 = vector.load %arg13[%c3, %c0_12] : memref<9x256xf32, #tpu.memory_space<vmem>>, vector<1x256xf32>
    %33 = vector.broadcast %32 : vector<1x256xf32> to vector<4x256xf32>
    %34 = arith.mulf %31, %33 : vector<4x256xf32>
    %35 = vector.extract_strided_slice %10 {offsets = [0, 1], sizes = [4, 255], strides = [1, 1]} : vector<4x256xf32> to vector<4x255xf32>
    %36 = vector.extract_strided_slice %10 {offsets = [0, 0], sizes = [4, 1], strides = [1, 1]} : vector<4x256xf32> to vector<4x1xf32>
    %37 = tpu.concatenate %35, %36 in 1 : vector<4x255xf32>, vector<4x1xf32> -> vector<4x256xf32>
    %c5 = arith.constant 5 : index
    %c0_13 = arith.constant 0 : index
    %38 = vector.load %arg13[%c5, %c0_13] : memref<9x256xf32, #tpu.memory_space<vmem>>, vector<1x256xf32>
    %39 = vector.broadcast %38 : vector<1x256xf32> to vector<4x256xf32>
    %40 = arith.mulf %37, %39 : vector<4x256xf32>
    %41 = vector.extract_strided_slice %10 {offsets = [0, 15], sizes = [4, 241], strides = [1, 1]} : vector<4x256xf32> to vector<4x241xf32>
    %42 = vector.extract_strided_slice %10 {offsets = [0, 0], sizes = [4, 15], strides = [1, 1]} : vector<4x256xf32> to vector<4x15xf32>
    %43 = tpu.concatenate %41, %42 in 1 : vector<4x241xf32>, vector<4x15xf32> -> vector<4x256xf32>
    %c6 = arith.constant 6 : index
    %c0_14 = arith.constant 0 : index
    %44 = vector.load %arg13[%c6, %c0_14] : memref<9x256xf32, #tpu.memory_space<vmem>>, vector<1x256xf32>
    %45 = vector.broadcast %44 : vector<1x256xf32> to vector<4x256xf32>
    %46 = arith.mulf %43, %45 : vector<4x256xf32>
    %47 = vector.extract_strided_slice %10 {offsets = [0, 16], sizes = [4, 240], strides = [1, 1]} : vector<4x256xf32> to vector<4x240xf32>
    %48 = vector.extract_strided_slice %10 {offsets = [0, 0], sizes = [4, 16], strides = [1, 1]} : vector<4x256xf32> to vector<4x16xf32>
    %49 = tpu.concatenate %47, %48 in 1 : vector<4x240xf32>, vector<4x16xf32> -> vector<4x256xf32>
    %c7 = arith.constant 7 : index
    %c0_15 = arith.constant 0 : index
    %50 = vector.load %arg13[%c7, %c0_15] : memref<9x256xf32, #tpu.memory_space<vmem>>, vector<1x256xf32>
    %51 = vector.broadcast %50 : vector<1x256xf32> to vector<4x256xf32>
    %52 = arith.mulf %49, %51 : vector<4x256xf32>
    %53 = vector.extract_strided_slice %10 {offsets = [0, 17], sizes = [4, 239], strides = [1, 1]} : vector<4x256xf32> to vector<4x239xf32>
    %54 = vector.extract_strided_slice %10 {offsets = [0, 0], sizes = [4, 17], strides = [1, 1]} : vector<4x256xf32> to vector<4x17xf32>
    %55 = tpu.concatenate %53, %54 in 1 : vector<4x239xf32>, vector<4x17xf32> -> vector<4x256xf32>
    %c8 = arith.constant 8 : index
    %c0_16 = arith.constant 0 : index
    %56 = vector.load %arg13[%c8, %c0_16] : memref<9x256xf32, #tpu.memory_space<vmem>>, vector<1x256xf32>
    %57 = vector.broadcast %56 : vector<1x256xf32> to vector<4x256xf32>
    %58 = arith.mulf %55, %57 : vector<4x256xf32>
    %59 = tpu.concatenate %16, %22, %28, %34, %10, %40, %46, %52, %58 in 0 : vector<4x256xf32>, vector<4x256xf32>, vector<4x256xf32>, vector<4x256xf32>, vector<4x256xf32>, vector<4x256xf32>, vector<4x256xf32>, vector<4x256xf32>, vector<4x256xf32> -> vector<36x256xf32>
    %c0_17 = arith.constant 0 : index
    %c0_18 = arith.constant 0 : index
    %60 = vector.load %arg3[%c0_17, %c0_18] : memref<4x36xf32, #tpu.memory_space<vmem>>, vector<4x36xf32>
    %cst_19 = arith.constant dense<0.000000e+00> : vector<4x256xf32>
    %61 = tpu.matmul %60, %59, %cst_19 {dimension_numbers = #tpu.dot_dimension_numbers<[1], [0], [0], [1], [0, 0, 1, 1], [], []>} : vector<4x36xf32>, vector<36x256xf32>, vector<4x256xf32> -> vector<4x256xf32>
    %c0_20 = arith.constant 0 : index
    %c0_21 = arith.constant 0 : index
    %62 = vector.load %arg7[%c0_20, %c0_21] : memref<4x1xf32, #tpu.memory_space<vmem>>, vector<4x1xf32>
    %63 = vector.broadcast %62 : vector<4x1xf32> to vector<4x256xf32>
    %64 = arith.mulf %61, %63 : vector<4x256xf32>
    %c0_22 = arith.constant 0 : index
    %c0_23 = arith.constant 0 : index
    %65 = vector.load %arg8[%c0_22, %c0_23] : memref<4x1xf32, #tpu.memory_space<vmem>>, vector<4x1xf32>
    %66 = vector.broadcast %65 : vector<4x1xf32> to vector<4x256xf32>
    %67 = arith.addf %64, %66 : vector<4x256xf32>
    %cst_24 = arith.constant 0.000000e+00 : f32
    %68 = vector.broadcast %cst_24 : f32 to vector<4x256xf32>
    %69 = arith.maximumf %67, %68 : vector<4x256xf32>
    %c0_25 = arith.constant 0 : index
    %c0_26 = arith.constant 0 : index
    %70 = vector.load %arg4[%c0_25, %c0_26] : memref<16x4xf32, #tpu.memory_space<vmem>>, vector<16x4xf32>
    %cst_27 = arith.constant dense<0.000000e+00> : vector<16x256xf32>
    %71 = tpu.matmul %70, %69, %cst_27 {dimension_numbers = #tpu.dot_dimension_numbers<[1], [0], [0], [1], [0, 0, 1, 1], [], []>} : vector<16x4xf32>, vector<4x256xf32>, vector<16x256xf32> -> vector<16x256xf32>
    %c0_28 = arith.constant 0 : index
    %c0_29 = arith.constant 0 : index
    %72 = vector.load %arg9[%c0_28, %c0_29] : memref<16x1xf32, #tpu.memory_space<vmem>>, vector<16x1xf32>
    %73 = vector.broadcast %72 : vector<16x1xf32> to vector<16x256xf32>
    %74 = arith.mulf %71, %73 : vector<16x256xf32>
    %c0_30 = arith.constant 0 : index
    %c0_31 = arith.constant 0 : index
    %75 = vector.load %arg10[%c0_30, %c0_31] : memref<16x1xf32, #tpu.memory_space<vmem>>, vector<16x1xf32>
    %76 = vector.broadcast %75 : vector<16x1xf32> to vector<16x256xf32>
    %77 = arith.addf %74, %76 : vector<16x256xf32>
    %cst_32 = arith.constant dense<0.000000e+00> : vector<16xf32>
    %78 = vector.multi_reduction <add>, %77, %cst_32 [1] : vector<16x256xf32> to vector<16xf32>
    %79 = vector.shape_cast %78 : vector<16xf32> to vector<16x1xf32>
    %cst_33 = arith.constant 2.560000e+02 : f32
    %80 = vector.broadcast %cst_33 : f32 to vector<16x1xf32>
    %81 = arith.divf %79, %80 : vector<16x1xf32>
    %cst_34 = arith.constant dense<0xFF800000> : vector<16xf32>
    %82 = vector.multi_reduction <maximumf>, %77, %cst_34 [1] : vector<16x256xf32> to vector<16xf32>
    %83 = vector.shape_cast %82 : vector<16xf32> to vector<16x1xf32>
    %84 = tpu.concatenate %81, %83 in 1 : vector<16x1xf32>, vector<16x1xf32> -> vector<16x2xf32>
    %c0_35 = arith.constant 0 : index
    %c0_36 = arith.constant 0 : index
    %85 = vector.load %arg11[%c0_35, %c0_36] : memref<8x16xf32, #tpu.memory_space<vmem>>, vector<8x16xf32>
    %cst_37 = arith.constant dense<0.000000e+00> : vector<8x2xf32>
    %86 = tpu.matmul %85, %84, %cst_37 {dimension_numbers = #tpu.dot_dimension_numbers<[1], [0], [0], [1], [0, 0, 1, 1], [], []>} : vector<8x16xf32>, vector<16x2xf32>, vector<8x2xf32> -> vector<8x2xf32>
    %cst_38 = arith.constant 0.000000e+00 : f32
    %87 = vector.broadcast %cst_38 : f32 to vector<8x2xf32>
    %88 = arith.maximumf %86, %87 : vector<8x2xf32>
    %89 = vector.extract_strided_slice %88 {offsets = [0, 0], sizes = [8, 1], strides = [1, 1]} : vector<8x2xf32> to vector<8x1xf32>
    %90 = vector.extract_strided_slice %88 {offsets = [0, 1], sizes = [8, 1], strides = [1, 1]} : vector<8x2xf32> to vector<8x1xf32>
    %91 = arith.addf %89, %90 : vector<8x1xf32>
    %c0_39 = arith.constant 0 : index
    %c0_40 = arith.constant 0 : index
    %92 = vector.load %arg12[%c0_39, %c0_40] : memref<16x8xf32, #tpu.memory_space<vmem>>, vector<16x8xf32>
    %cst_41 = arith.constant dense<0.000000e+00> : vector<16x1xf32>
    %93 = tpu.matmul %92, %91, %cst_41 {dimension_numbers = #tpu.dot_dimension_numbers<[1], [0], [0], [1], [0, 0, 1, 1], [], []>} : vector<16x8xf32>, vector<8x1xf32>, vector<16x1xf32> -> vector<16x1xf32>
    %94 = arith.negf %93 : vector<16x1xf32>
    %95 = math.exp %94 : vector<16x1xf32>
    %cst_42 = arith.constant 1.000000e+00 : f32
    %96 = vector.broadcast %cst_42 : f32 to vector<16x1xf32>
    %97 = arith.addf %96, %95 : vector<16x1xf32>
    %98 = arith.divf %96, %97 : vector<16x1xf32>
    %99 = vector.broadcast %98 : vector<16x1xf32> to vector<16x256xf32>
    %100 = arith.mulf %77, %99 : vector<16x256xf32>
    %cst_43 = arith.constant dense<0.000000e+00> : vector<256xf32>
    %101 = vector.multi_reduction <add>, %100, %cst_43 [0] : vector<16x256xf32> to vector<256xf32>
    %102 = vector.shape_cast %101 : vector<256xf32> to vector<1x256xf32>
    %cst_44 = arith.constant 1.600000e+01 : f32
    %103 = vector.broadcast %cst_44 : f32 to vector<1x256xf32>
    %104 = arith.divf %102, %103 : vector<1x256xf32>
    %cst_45 = arith.constant dense<0xFF800000> : vector<256xf32>
    %105 = vector.multi_reduction <maximumf>, %100, %cst_45 [0] : vector<16x256xf32> to vector<256xf32>
    %106 = vector.shape_cast %105 : vector<256xf32> to vector<1x256xf32>
    %107 = tpu.concatenate %104, %106 in 1 : vector<1x256xf32>, vector<1x256xf32> -> vector<1x512xf32>
    %c0_46 = arith.constant 0 : index
    %c0_47 = arith.constant 0 : index
    %108 = vector.load %arg14[%c0_46, %c0_47] : memref<512x256xf32, #tpu.memory_space<vmem>>, vector<512x256xf32>
    %cst_48 = arith.constant dense<0.000000e+00> : vector<1x256xf32>
    %109 = tpu.matmul %107, %108, %cst_48 {dimension_numbers = #tpu.dot_dimension_numbers<[1], [0], [0], [1], [0, 0, 1, 1], [], []>} : vector<1x512xf32>, vector<512x256xf32>, vector<1x256xf32> -> vector<1x256xf32>
    %110 = arith.negf %109 : vector<1x256xf32>
    %111 = math.exp %110 : vector<1x256xf32>
    %cst_49 = arith.constant 1.000000e+00 : f32
    %112 = vector.broadcast %cst_49 : f32 to vector<1x256xf32>
    %113 = arith.addf %112, %111 : vector<1x256xf32>
    %114 = arith.divf %112, %113 : vector<1x256xf32>
    %115 = vector.broadcast %114 : vector<1x256xf32> to vector<16x256xf32>
    %116 = arith.mulf %100, %115 : vector<16x256xf32>
    %117 = arith.addf %116, %0 : vector<16x256xf32>
    %cst_50 = arith.constant 0.000000e+00 : f32
    %118 = vector.broadcast %cst_50 : f32 to vector<16x256xf32>
    %119 = arith.maximumf %117, %118 : vector<16x256xf32>
    %c0_51 = arith.constant 0 : index
    %c0_52 = arith.constant 0 : index
    %120 = vector.load %arg15[%c0_51, %c0_52] : memref<16x256xf32, #tpu.memory_space<vmem>>, vector<16x256xf32>
    tpu.vector_store %arg15[%c0_51, %c0_52], %119 {strides = array<i32>} : memref<16x256xf32, #tpu.memory_space<vmem>>, vector<16x256xf32>,
    return
  }
  func.func @transform_0(%arg0: i32) -> (i32, i32) {
    %c0_i32 = arith.constant 0 : i32
    %c0_i32_0 = arith.constant 0 : i32
    return %c0_i32, %arg0 : i32, i32
  }
  func.func @transform_1(%arg0: i32) -> (i32, i32) {
    %c0_i32 = arith.constant 0 : i32
    %c0_i32_0 = arith.constant 0 : i32
    %c0_i32_1 = arith.constant 0 : i32
    return %c0_i32, %c0_i32_0 : i32, i32
  }
  func.func @transform_2(%arg0: i32) -> (i32, i32) {
    %c0_i32 = arith.constant 0 : i32
    %c0_i32_0 = arith.constant 0 : i32
    %c0_i32_1 = arith.constant 0 : i32
    return %c0_i32, %c0_i32_0 : i32, i32
  }
  func.func @transform_3(%arg0: i32) -> (i32, i32) {
    %c0_i32 = arith.constant 0 : i32
    %c0_i32_0 = arith.constant 0 : i32
    %c0_i32_1 = arith.constant 0 : i32
    return %c0_i32, %c0_i32_0 : i32, i32
  }
  func.func @transform_4(%arg0: i32) -> (i32, i32) {
    %c0_i32 = arith.constant 0 : i32
    %c0_i32_0 = arith.constant 0 : i32
    %c0_i32_1 = arith.constant 0 : i32
    return %c0_i32, %c0_i32_0 : i32, i32
  }
  func.func @transform_5(%arg0: i32) -> (i32, i32) {
    %c0_i32 = arith.constant 0 : i32
    %c0_i32_0 = arith.constant 0 : i32
    %c0_i32_1 = arith.constant 0 : i32
    return %c0_i32, %c0_i32_0 : i32, i32
  }
  func.func @transform_6(%arg0: i32) -> (i32, i32) {
    %c0_i32 = arith.constant 0 : i32
    %c0_i32_0 = arith.constant 0 : i32
    %c0_i32_1 = arith.constant 0 : i32
    return %c0_i32, %c0_i32_0 : i32, i32
  }
  func.func @transform_7(%arg0: i32) -> (i32, i32) {
    %c0_i32 = arith.constant 0 : i32
    %c0_i32_0 = arith.constant 0 : i32
    %c0_i32_1 = arith.constant 0 : i32
    return %c0_i32, %c0_i32_0 : i32, i32
  }
  func.func @transform_8(%arg0: i32) -> (i32, i32) {
    %c0_i32 = arith.constant 0 : i32
    %c0_i32_0 = arith.constant 0 : i32
    %c0_i32_1 = arith.constant 0 : i32
    return %c0_i32, %c0_i32_0 : i32, i32
  }
  func.func @transform_9(%arg0: i32) -> (i32, i32) {
    %c0_i32 = arith.constant 0 : i32
    %c0_i32_0 = arith.constant 0 : i32
    %c0_i32_1 = arith.constant 0 : i32
    return %c0_i32, %c0_i32_0 : i32, i32
  }
  func.func @transform_10(%arg0: i32) -> (i32, i32) {
    %c0_i32 = arith.constant 0 : i32
    %c0_i32_0 = arith.constant 0 : i32
    %c0_i32_1 = arith.constant 0 : i32
    return %c0_i32, %c0_i32_0 : i32, i32
  }
  func.func @transform_11(%arg0: i32) -> (i32, i32) {
    %c0_i32 = arith.constant 0 : i32
    %c0_i32_0 = arith.constant 0 : i32
    %c0_i32_1 = arith.constant 0 : i32
    return %c0_i32, %c0_i32_0 : i32, i32
  }
  func.func @transform_12(%arg0: i32) -> (i32, i32) {
    %c0_i32 = arith.constant 0 : i32
    %c0_i32_0 = arith.constant 0 : i32
    %c0_i32_1 = arith.constant 0 : i32
    return %c0_i32, %c0_i32_0 : i32, i32
  }
  func.func @transform_13(%arg0: i32) -> (i32, i32) {
    %c0_i32 = arith.constant 0 : i32
    %c0_i32_0 = arith.constant 0 : i32
    %c0_i32_1 = arith.constant 0 : i32
    return %c0_i32, %c0_i32_0 : i32, i32
  }
  func.func @transform_14(%arg0: i32) -> (i32, i32) {
    %c0_i32 = arith.constant 0 : i32
    %c0_i32_0 = arith.constant 0 : i32
    return %c0_i32, %arg0 : i32, i32
  }
}

</mosaic_0001>

<bundles_post_ra>
// kernel: tpu_custom_call.1
= control target key start
LH: loop header
LB: loop body
LE: loop exit
PB: predicated region body
PF: predicated region fallthrough
CT: control target
= control target key end

     0   :  { %s2521_s0 = inlined_call_operand.vmem [shape: f32[16,512], index: 0, kind: input, shape index: {}]   ;;  %s2522_s1 = inlined_call_operand.hbm [shape: f32[4,16], index: 1, kind: input, shape index: {}]   ;;  %s2523_s2 = inlined_call_operand.hbm [shape: f32[4,36], index: 2, kind: input, shape index: {}]   ;;  %s2524_s3 = inlined_call_operand.vmem [shape: f32[16,4], index: 3, kind: input, shape index: {}]   ;;  %s2525_s4 = inlined_call_operand.vmem [shape: f32[4,1], index: 4, kind: input, shape index: {}]   ;;  %s2526_s5 = inlined_call_operand.vmem [shape: f32[4,1], index: 5, kind: input, shape index: {}]   ;;  %s2527_s6 = inlined_call_operand.vmem [shape: f32[4,1], index: 6, kind: input, shape index: {}]   ;;  %s2528_s7 = inlined_call_operand.vmem [shape: f32[4,1], index: 7, kind: input, shape index: {}]   ;;  %s2529_s8 = inlined_call_operand.vmem [shape: f32[16,1], index: 8, kind: input, shape index: {}]   ;;  %s2530_s9 = inlined_call_operand.vmem [shape: f32[16,1], index: 9, kind: input, shape index: {}]   ;;  %s2531_s10 = inlined_call_operand.vmem [shape: f32[8,16], index: 10, kind: input, shape index: {}]   ;;  %s2532_s11 = inlined_call_operand.vmem [shape: f32[16,8], index: 11, kind: input, shape index: {}]   ;;  %s2533_s12 = inlined_call_operand.vmem [shape: f32[9,256], index: 12, kind: input, shape index: {}]   ;;  %s2534_s13 = inlined_call_operand.hbm [shape: f32[512,256], index: 13, kind: input, shape index: {}]   ;;  %s2535_s14 = inlined_call_operand.hbm [shape: f32[16,512], index: 14, kind: output, shape index: {}]  }
   0x1   :  { %2545 = sst [smem:[#allocation17_spill]] %s2522_s1 }
   0x2   :  { %2546 = sst [smem:[#allocation18_spill]] %s2523_s2 }
   0x3   :  { %19 = vsyncpa [#allocation4], 0 }
   0x4   :  { %20 = vsyncpa [#allocation7], 0 }
   0x5   :  { %21 = vsyncpa [#allocation5], 0 }
   0x6   :  { %23 = vsyncpa [#allocation5 + $0x1], 0  ;;  %s2157_s29 = smov 0   ;;  %s2159_s30 = smov 0  }
   0x7   :  { %s2161_s15 = smov 0   ;;  %s2163_s16 = smov 0  }
   0x8 LB: > { %2547 = sst [smem:[#allocation13_spill]] %s2049_s29  ;;  %s2178_s17 = sadd.s32 4294967295, %s2061_s16   ;;  %s2061_s16 = sphi %s2163_s16, %s2570_s16   ;;  %s2057_s15 = sphi %s2161_s15, %s2574_s15   ;;  %s2053_s30 = sphi %s2159_s30, %s2573_s30   ;;  %s2049_s29 = sphi %s2157_s29, %s2572_s29  }
   0x9   : > { %s1746_s18 = sadd.s32 4294967294, %s2061_s16   ;;  %s2182_s19 = sadd.s32 1, %s2061_s16  }
   0xa   : > { %2548 = sst [smem:[#allocation14_spill]] %s2182_s19  ;;  %s36_s20 = sadd.s32 1, %s2057_s15 }
   0xb   : > { %s33_s21 = ssub.s32 %s2061_s16, %s2182_s19  ;;  %p43_p0 = scmp.ne.s32.totalorder %s2057_s15, %s2053_s30 }
   0xc   : > { %p34_p1 = scmp.eq.s32.totalorder %s33_s21, 0  ;;  %p44_p2 = scmp.eq.s32.totalorder %s2061_s16, 0 }
   0xd   : > { %p346_p3 = scmp.eq.s32.totalorder %s2178_s17, 1  ;;  %p351_p4 = scmp.ne.s32.totalorder %s2053_s30, %s2049_s29 }
   0xe   : > { %s2194_s22 = scalar_select %p34_p1, %s2057_s15, %s36_s20  }
   0xf   : > { %p2196_p5 = por %p44_p2, %p43_p0  ;;  %p2200_p6 = por %p346_p3, %p43_p0 }
  0x10   : > { %2549 = sst [smem:[#allocation15_spill]] %s2194_s22  ;;  %p352_p7 = scmp.eq.s32.totalorder %s1746_s18, 1 }
  0x11   : > { %s2550_s23 = scalar_select %p2196_p5, 1, 0 }
  0x12   : > { %s2551_s24 = scalar_select %p2200_p6, 1, 0 }
  0x13   : > { %p1747_p8 = scmp.ge.s32.totalorder %s2061_s16, 1  ;;  %p359_p9 = scmp.lt.s32.totalorder %s2061_s16, 3 }
  0x14   : > { %p2206_p10 = por %p352_p7, %p351_p4  ;;  %p2539_p11 = scmp.eq.s32.totalorder %s2178_s17, 0 }
  0x15   : > { %p2211_p12 = pnand %p1747_p8, %p359_p9  ;;  %s2063_s27 = smov [#allocation6]  }
  0x16   : > { %s2552_s25 = scalar_select %p2206_p10, 1, 0 }
  0x17   : > { %s2554_s26 = scalar_select %p2211_p12, 1, 0 }
  0x18   : > { %2553 = sst [smem:[#allocation16_spill]] %s2552_s25  ;;  %s383_s28 = sshll.u32 %s2063_s27, 4  ;;  %s384_s28 = int_to_ptr.vmem [resolvable:$true] %s383_s28 }
  0x19   : > { %p1822_p13 = pneg %p2211_p12  ;;  %s2064_s20 = smov [#allocation3]  }
  0x1a   : > { %s372_s21 = sshll.u32 %s2064_s20, 4  ;;  %s2065_s22 = smov [#allocation8]   ;;  %s373_s21 = int_to_ptr.vmem [resolvable:$true] %s372_s21 }
  0x1b   : > { %p2219_p0 = pnand %p2539_p11, %p1822_p13  ;;  %s423_s19 = sshll.u32 %s2065_s22, 4  ;;  %s2223_s19 = int_to_ptr.vmem [resolvable:$true] %s423_s19 }
  0x1c   : > { %s1926_s27 = scalar_lea.vmem %s384_s28, 64  ;;  %p1934_p7 = scmp.lt.s32.totalorder %s384_s28, %s384_s28 }
  0x1d   : > { %p1917_p1 = pneg %p2219_p0  ;;  %p1927_p2 = scmp.ne.s32.totalorder %s384_s28, %s1926_s27 }
  0x1e   : > { %p1935_p8 = scmp.lt.s32.totalorder %s1926_s27, %s1926_s27 }
  0x1f   : > { %p1929_p3 = pnand %p1927_p2, %p1917_p1 }
  0x20   : > { %p1936_p9 = por %p1935_p8, %p1934_p7 }
  0x21   : > { %p1930_p4 = pneg %p1929_p3 }
  0x23   : > { %p1937_p13 = pnand %p1936_p9, %p1930_p4 }
  0x25   : > { %1940 = shalt.err (!%p1937_p13)
}
  0x26   : > { %s2556_s2 = sld [smem:[#allocation18_spill]]  ;;  %s1952_s22 = scalar_lea.vmem %s373_s21, 64 }
  0x27   : > { %p1953_p11 = scmp.ne.s32.totalorder %s373_s21, %s1952_s22  ;;  %p1960_p2 = scmp.lt.s32.totalorder %s373_s21, %s373_s21 }
  0x28   : > { %p1961_p3 = scmp.lt.s32.totalorder %s1952_s22, %s1952_s22 }
  0x29   : > { %p1955_p10 = pnand %p1953_p11, %p1917_p1 }
  0x2a   : > { %p1962_p12 = por %p1961_p3, %p1960_p2 }
  0x2b   : > { %p1956_p6 = pneg %p1955_p10 }
  0x2c   : > { %1828 = dma.hbm_to_vmem [thread:$0]  (!%p2219_p0), %s2556_s2, 64, %s384_s28, [#allocation7]  }
  0x2d   : > { %p1963_p5 = pnand %p1962_p12, %p1956_p6 }
  0x2f   : > { %1966 = shalt.err (!%p1963_p5)
}
  0x30   : > { %s2557_s1 = sld [smem:[#allocation17_spill]]  ;;  %s1978_s25 = scalar_lea.vmem %s2223_s19, 16384 }
  0x31   : > { %p1979_p4 = scmp.ne.s32.totalorder %s2223_s19, %s1978_s25  ;;  %p1986_p7 = scmp.lt.s32.totalorder %s2223_s19, %s2223_s19 }
  0x32   : > { %p1987_p6 = scmp.lt.s32.totalorder %s1978_s25, %s1978_s25 }
  0x33   : > { %p1981_p10 = pnand %p1979_p4, %p1917_p1 }
  0x34   : > { %p1988_p5 = por %p1987_p6, %p1986_p7 }
  0x35   : > { %p1982_p11 = pneg %p1981_p10 }
  0x36   : > { %1825 = dma.hbm_to_vmem [thread:$0]  (!%p2219_p0), %s2557_s1, 64, %s373_s21, [#allocation4]  }
  0x37   : > { %p1989_p12 = pnand %p1988_p5, %p1982_p11 }
  0x39   : > { %1992 = shalt.err (!%p1989_p12)
}
  0x3a   : > { %s2066_s28 = smov 256   ;;  %s2067_s29 = smov 16  }
  0x3b   : > { %1831 = dma.hbm_to_vmem [thread:$0]  (!%p2219_p0), %s2534_s13, 16384, %s2223_s19, [#allocation7], %s2066_s28, %s2066_s28, %s2067_s29  }
  0x3c   : > { %p1751_p8 = scmp.ge.s32.totalorder %s2061_s16, 2 }
  0x3d   : > { %p2558_p1 = scmp.ne.s32.totalorder (!%p1751_p8), %s2550_s23, 0 }
  0x3e   : > { %433 = sbr.rel (%p1751_p8) target bundleno = 73 (0x49), region = 68 }
  0x43   : > { %436 = sbr.rel (!%p2558_p1) target bundleno = 73 (0x49), region = 72  ;;  %s438_s21 = sand.u32 (%p2558_p1), 1, %s2057_s15  }
  0x44   : > { %s1788_s27 = sshll.u32 (%p2558_p1), %s2061_s16, 4  ;;  %s1752_s25 = sshll.u32 (%p2558_p1), %s438_s21, 5 }
  0x45   : > { %s443_s18 = scalar_lea.vmem (%p2558_p1), %s2521_s0, %s1788_s27  ;;  %s440_s19 = scalar_lea.vmem (%p2558_p1), [#allocation2], %s1752_s25 }
  0x46   : > { %v456_v0 = vld [vmem:[%s443_s18] sm:$0xff] (%p2558_p1)  ;;  %v458_v1 = vld [vmem:[%s443_s18 + $0x8] sm:$0xff] (%p2558_p1) }
  0x47   : > { %v460_v2 = vld [vmem:[%s443_s18 + $0x20] sm:$0xff] (%p2558_p1)  ;;  %457 = vst [vmem:[%s440_s19] sm:$0xff] (%p2558_p1), %v456_v0  ;;  %459 = vst [vmem:[%s440_s19 + $0x8] sm:$0xff] (%p2558_p1), %v458_v1  ;;  %v462_v3 = vld [vmem:[%s443_s18 + $0x28] sm:$0xff] (%p2558_p1) }
  0x48   : > { %461 = vst [vmem:[%s440_s19 + $0x10] sm:$0xff] %v460_v2  ;;  %463 = vst [vmem:[%s440_s19 + $0x18] sm:$0xff] %v462_v3 }
  0x49 PF: > { %p2559_p0 = scmp.ne.s32.totalorder %s2554_s26, 0 }
  0x4a   : > { %s2544_s23 = sand.u32 (!%p2559_p0), 1, %s2053_s30   ;;  %p2560_p9 = scmp.eq.s32.totalorder (!%p2559_p0), %s2178_s17, 0 }
  0x4b   : > { %472 = sbr.rel (%p2559_p0) target bundleno = 1935 (0x78f), region = 95  ;;  %s2271_s1 = sshll.u32 (!%p2559_p0), %s2544_s23, 5 }
  0x4c   : > { %s2274_s2 = scalar_lea.vmem (!%p2559_p0), [#allocation2], %s2271_s1 }
  0x50   : > { %2036 = dma.done.wait (%p2560_p9), [#allocation4], 64   ;;  %p2561_p13 = pmov %p2560_p9 }
  0x51   : > { %p2562_p2 = pmov %p2560_p9 }
  0x52   : > { %2038 = vsyncadd (%p2561_p13), [#allocation4], 4294967232 }
  0x53   : > { %2040 = dma.done.wait (%p2562_p2), [#allocation7], 16448   ;;  %p2563_p3 = pmov %p2562_p2 }
  0x54   : > { %v2068_v4 = vmov 0.0   ;;  %v2069_v5 = vmov 0   ;;  %v537_v6 = vld [vmem:[%s2274_s2 + $0x18] sm:$0xff]  ;;  %v536_v7 = vld [vmem:[%s2274_s2 + $0x10] sm:$0xff]  ;;  %v535_v8 = vld [vmem:[%s2274_s2 + $0x8] sm:$0xff]  ;;  %vm539_vm0 = vcmask 130048   ;;  %v646_v33 = vlaneseq }
  0x55   : > { %2042 = vsyncadd (%p2563_p3), [#allocation7], 4294950848  ;;  %607 = vmatprep.mubr.f32.mxu0 %v2068_v4  ;;  %1893 = vset.pattern.permute.xlu0 %v2069_v5  ;;  %v534_v9 = vld [vmem:[%s2274_s2] sm:$0xff]  ;;  %s2070_s22 = smov 111   ;;  %s2071_s21 = smov 112   ;;  %v1058_v24 = vld [vmem:[%s2529_s8 + $0x8] sm:$0xff] }
  0x56   : > { %940 = vmatprep.mubr.f32.mxu1 %v2068_v4  ;;  %1894 = vset.pattern.permute.xlu1 %v2069_v5  ;;  %v614_v10 = vld [vmem:[%s2525_s4] sm:$0xf]  ;;  %s2072_s27 = smov 127   ;;  %s2073_s25 = smov 1   ;;  %v1074_v25 = vld [vmem:[%s2530_s9 + $0x8] sm:$0xff]  ;;  %v647_v36 = vshrl.u32 %v646_v33, 7 }
  0x57   : > { %571 = vmatprep.subr.mxu0 %v537_v6  ;;  %v538_v11 = vld [vmem:[#allocation3] sm:$0xf]  ;;  %617 = vperm.xlu0 %1893, %v614_v10   ;;  %s2074_s18 = smov 113   ;;  %s2543_s19 = smov 16   ;;  %vm811_vm1 = vcmask 908288   ;;  %vm786_vm2 = vcmask 916480  }
  0x58   : > { %572 = vmatpush1.msra.mxu0 %v536_v7  ;;  %v622_v12 = vld [vmem:[%s2526_s5] sm:$0xf]  ;;  %s2076_s26 = smov 15   ;;  %s2077_s28 = smov 17   ;;  %v2345_v38 = vsub.s32 0, %v647_v36  ;;  %v2347_v39 = vsub.s32 1, %v647_v36 }
  0x59   : > { %573 = vmatprep.subr.mxu0 %v535_v8  ;;  %v947_v23 = vld [vmem:[%s2527_s6] sm:$0xf]  ;;  %v1768_v37 = vld [vmem:[%s2533_s12 + $0x10] ss:$8 sm:$0x3]  ;;  %vm712_vm3 = vcmask 7168  }
  0x5a   : > { %574 = vmatpush1.msra.mxu0 %v534_v9  ;;  %v955_v26 = vld [vmem:[%s2528_s7] sm:$0xf]  ;;  %v1767_v41 = vld [vmem:[%s2533_s12 + $0x7] ss:$8 sm:$0x3]  ;;  %v823_v43 = vrot.slane %v1768_v37, %v2345_v38  ;;  %v827_v44 = vrot.slane %v1768_v37, %v2347_v39  ;;  %vm856_vm4 = vcmask 1043456  }
  0x5b   : > { %1761 = vmatmul.mubr.msk.f32.vlgmr.msra.gmra.mxu0 %vm539_vm0, %v538_v11  ;;  %625 = vperm.xlu0 %1893, %v622_v12   ;;  %v1057_v27 = vld [vmem:[%s2529_s8] sm:$0xff]  ;;  %v798_v46 = vrot.slane %v1767_v41, %v2345_v38  ;;  %v802_v47 = vrot.slane %v1767_v41, %v2347_v39  ;;  %vm736_vm5 = vcmask 1039360   ;;  %vm761_vm6 = vcmask 924672   ;;  %s531_s29 = scalar_lea.vmem [#allocation9], %s2271_s1  ;;  %p2565_p10 = scmp.ne.s32.totalorder %s2551_s24, 0 }
  0x5c   : > { %1044 = vmatprep.mubr.f32.mxu0 %v2068_v4  ;;  %v1073_v28 = vld [vmem:[%s2530_s9] sm:$0xff]  ;;  %vm687_vm7 = vcmask 121856   ;;  %vm639_vm8 = vcmask 138240   ;;  %vm866_vm9 = vcmask 293888   ;;  %vm967_vm10 = vcmask 31744   ;;  %s1647_s20 = sshll.u32 %s531_s29, 4  ;;  %s2475_s20 = int_to_ptr.vmem [resolvable:$true] %s1647_s20 }
  0x5d   : > { %v1765_v45 = vld [vmem:[%s2533_s12 + $0x5] ss:$8 sm:$0x3]  ;;  %v1764_v49 = vld [vmem:[%s2533_s12 + $0x3] ss:$8 sm:$0x3] }
  0x5e   : > { %v752_v52 = vrot.slane %v1765_v45, %v2347_v39  ;;  %v748_v57 = vrot.slane %v1765_v45, %v2345_v38  ;;  %v1766_v58 = vld [vmem:[%s2533_s12 + $0x6] ss:$8 sm:$0x3]  ;;  %v723_v59 = vrot.slane %v1764_v49, %v2345_v38  ;;  %v727_v60 = vrot.slane %v1764_v49, %v2347_v39  ;;  %v1762_v63 = vld [vmem:[%s2533_s12 + $0x1] ss:$8 sm:$0x3] }
  0x5f   : > { %v1763_v7 = vld [vmem:[%s2533_s12 + $0x2] ss:$8 sm:$0x3]  ;;  %v773_v9 = vrot.slane %v1766_v58, %v2345_v38  ;;  %v777_v10 = vrot.slane %v1766_v58, %v2347_v39  ;;  %v673_v11 = vrot.slane %v1762_v63, %v2345_v38  ;;  %v677_v12 = vrot.slane %v1762_v63, %v2347_v39 }
  0x60   : > { %vm2078_vm11 = vmmov 0   ;;  %vm1188_vm12 = vcmask 64512  }
  0xd2   : > { %v618_v13 = vpop.permute.xlu0 %617 }
  0xd6   : > { %v626_v16 = vpop.permute.xlu0 %625 }
 0x11b   : > { %v609_v14 = vpop.f32.mrf.mxu0 }
 0x11c   : > { %v620_v15 = vmul.f32 %v618_v13, %v609_v14 }
 0x11d   : > { %v611_v19 = vpop.f32.mrf.mxu0 }
 0x11e   : > { %v628_v17 = vadd.f32 %v626_v16, %v620_v15  ;;  %v621_v20 = vmul.f32 %v618_v13, %v611_v19  ;;  %v702_v19 = vrot.slane %v1763_v7, %v2347_v39 }
 0x120   : > { %v2298_v18 = vmax.f32 %v628_v17, 0.0  ;;  %v629_v21 = vadd.f32 %v626_v16, %v621_v20  ;;  %v698_v17 = vrot.slane %v1763_v7, %v2345_v38  ;;  %v644_v20 = vld [vmem:[%s2533_s12] ss:$8 sm:$0x3] }
 0x121   : > { %v649_v33 = vrot.slane %v644_v20, %v2345_v38  ;;  %v653_v41 = vrot.slane %v644_v20, %v2347_v39  ;;  %v965_v7 = vld [vmem:[%s2524_s3] sm:$0xff] }
 0x122   : > { %807 = vrot.lane.b32.xlu0 %v2298_v18, %s2070_s22  ;;  %782 = vrot.lane.b32.xlu1 %v2298_v18, %s2071_s21  ;;  %v2308_v22 = vmax.f32 %v629_v21, 0.0 }
 0x126   : > { %732 = vrot.lane.b32.xlu0 %v2298_v18, %s2072_s27  ;;  %710 = vrot.lane.b32.xlu1 %v2298_v18, %s2073_s25 }
 0x12a   : > { %757 = vrot.lane.b32.xlu0 %v2298_v18, %s2074_s18  ;;  %661 = vrot.lane.b32.xlu1 %v2298_v18, %s2543_s19 }
 0x12e   : > { %707 = vrot.lane.b32.xlu0 %v2308_v22, %s2073_s25  ;;  %784 = vrot.lane.b32.xlu1 %v2308_v22, %s2071_s21 }
 0x132   : > { %658 = vrot.lane.b32.xlu0 %v2308_v22, %s2543_s19  ;;  %809 = vrot.lane.b32.xlu1 %v2308_v22, %s2070_s22  ;;  %s2079_s19 = smov [#allocation9]  }
 0x136   : > { %682 = vrot.lane.b32.xlu0 %v2308_v22, %s2076_s26  ;;  %734 = vrot.lane.b32.xlu1 %v2308_v22, %s2072_s27 }
 0x13a   : > { %633 = vrot.lane.b32.xlu0 %v2308_v22, %s2077_s28  ;;  %759 = vrot.lane.b32.xlu1 %v2308_v22, %s2074_s18 }
 0x13e   : > { %950 = vperm.xlu0 %1893, %v947_v23   ;;  %685 = vrot.lane.b32.xlu1 %v2298_v18, %s2076_s26 }
 0x142   : > { %1066 = vperm.xlu0 %1893, %v1058_v24   ;;  %637 = vrot.lane.b32.xlu1 %v2298_v18, %s2077_s28  ;;  %s1997_s28 = sshll.u32 %s2079_s19, 4  ;;  %s1998_s28 = int_to_ptr.vmem [resolvable:$false] %s1997_s28 }
 0x143   : > { %s1999_s22 = scalar_lea.vmem %s1998_s28, 1024  ;;  %p2000_p6 = scmp.lt.s32.totalorder %s2475_s20, %s1998_s28 }
 0x146   : > { %1082 = vperm.xlu0 %1893, %v1074_v25   ;;  %958 = vperm.xlu1 %1894, %v955_v26  }
 0x14a   : > { %1061 = vperm.xlu1 %1894, %v1057_v27  }
 0x14e   : > { %1077 = vperm.xlu1 %1894, %v1073_v28  }
 0x194   : > { %v808_v29 = vpop.permute.xlu0 %807  ;;  %v783_v30 = vpop.permute.xlu1 %782 }
 0x198   : > { %v733_v31 = vpop.permute.xlu0 %732  ;;  %v711_v32 = vpop.permute.xlu1 %710 }
 0x19c   : > { %v758_v34 = vpop.permute.xlu0 %757  ;;  %v2340_v35 = vpop.permute.xlu1 %661 }
 0x1a0   : > { %v785_v40 = vpop.permute.xlu1 %784  ;;  %v708_v42 = vpop.permute.xlu0 %707 }
 0x1a1   : > { %v787_v53 = vsel %vm786_vm2, %v783_v30, %v785_v40  ;;  %v791_v54 = vsel %vm786_vm2, %v785_v40, %v783_v30  ;;  %v713_v61 = vsel %vm712_vm3, %v711_v32, %v708_v42  ;;  %v716_v62 = vsel %vm712_vm3, %v708_v42, %v711_v32 }
 0x1a2   : > { %v805_v2 = vmul.f32 %v798_v46, %v787_v53  ;;  %v806_v3 = vmul.f32 %v802_v47, %v791_v54  ;;  %v730_v14 = vmul.f32 %v723_v59, %v716_v62  ;;  %v731_v15 = vmul.f32 %v727_v60, %v713_v61  ;;  %v865_v59 = vld [vmem:[#allocation6] sm:$0xf] }
 0x1a4   : > { %v810_v48 = vpop.permute.xlu1 %809  ;;  %v659_v0 = vpop.permute.xlu0 %658  ;;  %v852_v21 = vrot.slane %v805_v2, 4  ;;  %v853_v23 = vrot.slane %v806_v3, 4  ;;  %v840_v36 = vrot.slane %v730_v14, 4  ;;  %v841_v42 = vrot.slane %v731_v15, 4 }
 0x1a5   : > { %v812_v50 = vsel %vm811_vm1, %v808_v29, %v810_v48  ;;  %v816_v51 = vsel %vm811_vm1, %v810_v48, %v808_v29  ;;  %v666_v26 = vsel %vm539_vm0, %v659_v0, %v2340_v35 }
 0x1a6   : > { %v830_v55 = vmul.f32 %v823_v43, %v812_v50  ;;  %v831_v56 = vmul.f32 %v827_v44, %v816_v51  ;;  %v680_v43 = vmul.f32 %v673_v11, %v666_v26 }
 0x1a8   : > { %1769 = vmatprep.subr.msk.mxu1 %vm856_vm4, %v831_v56  ;;  %v735_v1 = vpop.permute.xlu1 %734  ;;  %v683_v27 = vpop.permute.xlu0 %682 }
 0x1a9   : > { %v737_v5 = vsel %vm736_vm5, %v733_v31, %v735_v1  ;;  %v741_v6 = vsel %vm736_vm5, %v735_v1, %v733_v31  ;;  %1770 = vmatpush1.msk.msra.mxu1 %vm856_vm4, %v830_v55  ;;  %v663_v31 = vsel %vm539_vm0, %v2340_v35, %v659_v0  ;;  %v834_v55 = vrot.slane %v680_v43, 4  ;;  %v1186_v43 = vld [vmem:[%s2532_s11] sm:$0xff] }
 0x1aa   : > { %v756_v8 = vmul.f32 %v752_v52, %v741_v6  ;;  %v755_v13 = vmul.f32 %v748_v57, %v737_v5  ;;  %v681_v35 = vmul.f32 %v677_v12, %v663_v31 }
 0x1ac   : > { %v760_v16 = vpop.permute.xlu1 %759  ;;  %v847_v28 = vrot.slane %v756_v8, 4  ;;  %v846_v32 = vrot.slane %v755_v13, 4  ;;  %v634_v50 = vpop.permute.xlu0 %633  ;;  %v835_v56 = vrot.slane %v681_v35, 4  ;;  %v966_v8 = vld [vmem:[%s2524_s3 + $0x8] sm:$0xff] }
 0x1ad   : > { %v762_v24 = vsel %vm761_vm6, %v758_v34, %v760_v16  ;;  %v766_v25 = vsel %vm761_vm6, %v760_v16, %v758_v34 }
 0x1ae   : > { %v780_v29 = vmul.f32 %v773_v9, %v762_v24  ;;  %v781_v30 = vmul.f32 %v777_v10, %v766_v25  ;;  %v862_v48 = vsel %vm856_vm4, %v2308_v22, %v847_v28  ;;  %v861_v49 = vsel %vm856_vm4, %v2298_v18, %v846_v32 }
 0x1b0   : > { %v686_v37 = vpop.permute.xlu1 %685  ;;  %v864_v40 = vsel %vm856_vm4, %v781_v30, %v853_v23  ;;  %v863_v34 = vsel %vm856_vm4, %v780_v29, %v852_v21 }
 0x1b1   : > { %v688_v44 = vsel %vm687_vm7, %v686_v37, %v683_v27  ;;  %v691_v45 = vsel %vm687_vm7, %v683_v27, %v686_v37  ;;  %900 = vmatprep.subr.mxu1 %v864_v40 }
 0x1b2   : > { %v705_v46 = vmul.f32 %v698_v17, %v691_v45  ;;  %v706_v47 = vmul.f32 %v702_v19, %v688_v44  ;;  %901 = vmatpush1.msra.mxu1 %v863_v34 }
 0x1b3   : > { %902 = vmatprep.subr.mxu1 %v862_v48  ;;  %v1422_v48 = vld [vmem:[#allocation8 + $0x2f8] sm:$0xff] }
 0x1b4   : > { %903 = vmatpush1.msra.mxu1 %v861_v49  ;;  %v638_v39 = vpop.permute.xlu1 %637  ;;  %v860_v51 = vsel %vm856_vm4, %v706_v47, %v841_v42  ;;  %v859_v52 = vsel %vm856_vm4, %v705_v46, %v840_v36  ;;  %v1187_v47 = vld [vmem:[%s2532_s11 + $0x8] sm:$0xff]  ;;  %v1421_v49 = vld [vmem:[#allocation8 + $0x2f0] sm:$0xff] }
 0x1b5   : > { %v640_v53 = vsel %vm639_vm8, %v638_v39, %v634_v50  ;;  %v643_v54 = vsel %vm639_vm8, %v634_v50, %v638_v39  ;;  %904 = vmatprep.subr.mxu1 %v860_v51  ;;  %v1358_v50 = vld [vmem:[#allocation8 + $0xf8] sm:$0xff]  ;;  %v1420_v39 = vld [vmem:[#allocation8 + $0x2e8] sm:$0xff]  ;;  %v1357_v51 = vld [vmem:[#allocation8 + $0xf0] sm:$0xff] }
 0x1b6   : > { %v656_v57 = vmul.f32 %v649_v33, %v643_v54  ;;  %v657_v22 = vmul.f32 %v653_v41, %v640_v53  ;;  %905 = vmatpush1.msra.mxu1 %v859_v52  ;;  %v1106_v41 = vld [vmem:[%s2531_s10] sm:$0xff]  ;;  %v1419_v52 = vld [vmem:[#allocation8 + $0x2e0] sm:$0xff]  ;;  %v1356_v53 = vld [vmem:[#allocation8 + $0xe8] sm:$0xff] }
 0x1b7   : > { %v1418_v54 = vld [vmem:[#allocation8 + $0x2d8] sm:$0xff] }
 0x1b8   : > { %v858_v58 = vsel %vm856_vm4, %v657_v22, %v835_v56  ;;  %v857_v18 = vsel %vm856_vm4, %v656_v57, %v834_v55  ;;  %v1355_v55 = vld [vmem:[#allocation8 + $0xe0] sm:$0xff]  ;;  %v1417_v56 = vld [vmem:[#allocation8 + $0x2d0] sm:$0xff]  ;;  %v1354_v57 = vld [vmem:[#allocation8 + $0xd8] sm:$0xff] }
 0x1b9   : > { %906 = vmatprep.subr.mxu1 %v858_v58  ;;  %v951_v60 = vpop.permute.xlu0 %950  ;;  %v1416_v22 = vld [vmem:[#allocation8 + $0x2c8] sm:$0xff]  ;;  %v1353_v58 = vld [vmem:[#allocation8 + $0xd0] sm:$0xff] }
 0x1ba   : > { %907 = vmatpush1.msra.mxu1 %v857_v18  ;;  %v1352_v18 = vld [vmem:[#allocation8 + $0xc8] sm:$0xff] }
 0x1bb   : > { %1771 = vmatmul.mubr.msk.f32.vlgmr.msra.gmra.mxu1 %vm866_vm9, %v865_v59  ;;  %1796 = vmatprep.subr.mxu1 %v2068_v4  ;;  %v1415_v59 = vld [vmem:[#allocation8 + $0x2c0] sm:$0xff] }
 0x1bc   : > { %1800 = vmatprep.mubr.msk.f32.mxu1 %vm2078_vm11, %v2068_v4 }
 0x1bd   : > { %v1067_v12 = vpop.permute.xlu0 %1066 }
 0x1c1   : > { %v959_v0 = vpop.permute.xlu1 %958  ;;  %v1083_v25 = vpop.permute.xlu0 %1082 }
 0x1c5   : > { %v1062_v9 = vpop.permute.xlu1 %1061 }
 0x1c9   : > { %v1078_v15 = vpop.permute.xlu1 %1077 }
 0x27b   : > { %v942_v61 = vpop.f32.mrf.mxu1 }
 0x27c   : > { %v953_v62 = vmul.f32 %v951_v60, %v942_v61  ;;  %v1414_v61 = vld [vmem:[#allocation8 + $0x2b8] sm:$0xff] }
 0x27d   : > { %v944_v63 = vpop.f32.mrf.mxu1 }
 0x27e   : > { %v954_v1 = vmul.f32 %v951_v60, %v944_v63  ;;  %v961_v2 = vadd.f32 %v959_v0, %v953_v62  ;;  %v1351_v60 = vld [vmem:[#allocation8 + $0xc0] sm:$0xff]  ;;  %v1350_v62 = vld [vmem:[#allocation8 + $0xb8] sm:$0xff]  ;;  %v1413_v63 = vld [vmem:[#allocation8 + $0x2b0] sm:$0xff] }
 0x280   : > { %v962_v3 = vadd.f32 %v959_v0, %v954_v1  ;;  %v963_v6 = vmax.f32 %v961_v2, 0.0  ;;  %v1349_v0 = vld [vmem:[#allocation8 + $0xb0] sm:$0xff]  ;;  %v1412_v1 = vld [vmem:[#allocation8 + $0x2a8] sm:$0xff] }
 0x281   : > { %v1348_v2 = vld [vmem:[#allocation8 + $0xa8] sm:$0xff] }
 0x282   : > { %v964_v5 = vmax.f32 %v962_v3, 0.0  ;;  %v1411_v3 = vld [vmem:[#allocation8 + $0x2a0] sm:$0xff] }
 0x284   : > { %1772 = vmatprep.subr.msk.mxu0 %vm856_vm4, %v964_v5  ;;  %v1347_v5 = vld [vmem:[#allocation8 + $0xa0] sm:$0xff] }
 0x285   : > { %1773 = vmatpush1.msk.msra.mxu0 %vm856_vm4, %v963_v6  ;;  %v1410_v6 = vld [vmem:[#allocation8 + $0x298] sm:$0xff] }
 0x286   : > { %1774 = vmatmul.mubr.msk.f32.vlgmr.msra.gmra.mxu0 %vm967_vm10, %v965_v7  ;;  %v1346_v7 = vld [vmem:[#allocation8 + $0x98] sm:$0xff] }
 0x287   : > { %1050 = vmatprep.mubr.f32.mxu0 %v2068_v4 }
 0x28a   : > { %1775 = vmatmul.mubr.msk.f32.gmra.mxu0 %vm967_vm10, %v966_v8  ;;  %v1409_v8 = vld [vmem:[#allocation8 + $0x290] sm:$0xff] }
 0x28b   : > { %1805 = vmatprep.mubr.msk.f32.mxu0 %vm1188_vm12, %v1186_v43  ;;  %v1396_v43 = vld [vmem:[#allocation8 + $0x228] sm:$0xff] }
 0x346   : > { %v1046_v10 = vpop.f32.mrf.mxu0 }
 0x347   : > { %v1069_v11 = vmul.f32 %v1062_v9, %v1046_v10  ;;  %v1408_v10 = vld [vmem:[#allocation8 + $0x288] sm:$0xff] }
 0x348   : > { %v1048_v13 = vpop.f32.mrf.mxu0 }
 0x349   : > { %v1070_v14 = vmul.f32 %v1062_v9, %v1048_v13  ;;  %v2422_v17 = vadd.f32 %v1078_v15, %v1069_v11  ;;  %v1345_v9 = vld [vmem:[#allocation8 + $0x90] sm:$0xff]  ;;  %v1344_v11 = vld [vmem:[#allocation8 + $0x88] sm:$0xff]  ;;  %v1343_v13 = vld [vmem:[#allocation8 + $0x80] sm:$0xff] }
 0x34a   : > { %v1052_v16 = vpop.f32.mrf.mxu0 }
 0x34b   : > { %v2424_v19 = vadd.f32 %v1078_v15, %v1070_v14  ;;  %v1071_v20 = vmul.f32 %v1067_v12, %v1052_v16  ;;  %v1406_v14 = vld [vmem:[#allocation8 + $0x278] sm:$0xff]  ;;  %v1405_v16 = vld [vmem:[#allocation8 + $0x270] sm:$0xff] }
 0x34c   : > { %v1054_v21 = vpop.f32.mrf.mxu0  ;;  %v1342_v15 = vld [vmem:[#allocation8 + $0x78] sm:$0xff] }
 0x34d   : > { %v1072_v23 = vmul.f32 %v1067_v12, %v1054_v21  ;;  %v1089_v24 = vadd.f32 %v2424_v19, %v2422_v17  ;;  %v2428_v26 = vadd.f32 %v1083_v25, %v1071_v20  ;;  %v1098_v30 = vmax.f32 %v2422_v17, %v2424_v19  ;;  %v1407_v12 = vld [vmem:[#allocation8 + $0x280] sm:$0xff]  ;;  %v1341_v20 = vld [vmem:[#allocation8 + $0x70] sm:$0xff]  ;;  %v1404_v21 = vld [vmem:[#allocation8 + $0x268] sm:$0xff] }
 0x34f   : > { %v2430_v27 = vadd.f32 %v1083_v25, %v1072_v23  ;;  %1090 = vadd.xlane.f32.xlu1 %v1089_v24  ;;  %v1340_v23 = vld [vmem:[#allocation8 + $0x68] sm:$0xff]  ;;  %v1403_v24 = vld [vmem:[#allocation8 + $0x260] sm:$0xff] }
 0x350   : > { %v1339_v25 = vld [vmem:[#allocation8 + $0x60] sm:$0xff] }
 0x351   : > { %v1092_v28 = vadd.f32 %v2430_v27, %v2428_v26  ;;  %v1101_v29 = vmax.f32 %v2428_v26, %v2430_v27 }
 0x353   : > { %1093 = vadd.xlane.f32.xlu0 %v1092_v28  ;;  %v1402_v28 = vld [vmem:[#allocation8 + $0x258] sm:$0xff] }
 0x357   : > { %1102 = vmax.xlane.f32.xlu0 %v1101_v29  ;;  %v1338_v29 = vld [vmem:[#allocation8 + $0x58] sm:$0xff] }
 0x35b   : > { %1099 = vmax.xlane.f32.xlu0 %v1098_v30  ;;  %v1401_v30 = vld [vmem:[#allocation8 + $0x250] sm:$0xff] }
 0x3d8   : > { %v1091_v33 = vpop.xlane.xlu1 %1090 }
 0x3d9   : > { %v1096_v40 = vmul.f32 0.00390625, %v1091_v33  ;;  %v1336_v33 = vld [vmem:[#allocation8 + $0x48] sm:$0xff] }
 0x3dc   : > { %v1094_v31 = vpop.xlane.xlu0 %1093 }
 0x3dd   : > { %v1097_v32 = vmul.f32 0.00390625, %v1094_v31  ;;  %v1337_v31 = vld [vmem:[#allocation8 + $0x50] sm:$0xff] }
 0x3e0   : > { %v1103_v36 = vpop.xlane.xlu0 %1102 }
 0x3e1   : > { %v1105_v37 = vsel %vm712_vm3, %v1097_v32, %v1103_v36  ;;  %v1400_v32 = vld [vmem:[#allocation8 + $0x248] sm:$0xff]  ;;  %v1399_v36 = vld [vmem:[#allocation8 + $0x240] sm:$0xff] }
 0x3e2   : > { %1797 = vmatpush3.msra.mxu1 %v1105_v37  ;;  %v1335_v37 = vld [vmem:[#allocation8 + $0x40] sm:$0xff] }
 0x3e3   : > { %1798 = vmatprep.subr.mxu1 %v2068_v4 }
 0x3e4   : > { %v1100_v34 = vpop.xlane.xlu0 %1099 }
 0x3e5   : > { %v1104_v42 = vsel %vm712_vm3, %v1096_v40, %v1100_v34  ;;  %v1398_v40 = vld [vmem:[#allocation8 + $0x238] sm:$0xff] }
 0x3e6   : > { %1799 = vmatpush3.msra.mxu1 %v1104_v42  ;;  %v1334_v34 = vld [vmem:[#allocation8 + $0x38] sm:$0xff]  ;;  %v1333_v42 = vld [vmem:[#allocation8 + $0x30] sm:$0xff] }
 0x3e7   : > { %1801 = vmatmul.mubr.msk.f32.vlgmr.msra.gmra.mxu1 %vm539_vm0, %v1106_v41  ;;  %1455 = vmatprep.subr.mxu1 %v1358_v50  ;;  %v1397_v41 = vld [vmem:[#allocation8 + $0x230] sm:$0xff]  ;;  %v1328_v50 = vld [vmem:[#allocation8 + $0x8] sm:$0xff] }
 0x3e8   : > { %1456 = vmatpush1.msra.mxu1 %v1357_v51  ;;  %v1327_v51 = vld [vmem:[#allocation8] sm:$0xff] }
 0x3e9   : > { %1457 = vmatprep.subr.mxu1 %v1356_v53  ;;  %v1390_v53 = vld [vmem:[#allocation8 + $0x1f8] sm:$0xff] }
 0x3ea   : > { %1458 = vmatpush1.msra.mxu1 %v1355_v55  ;;  %v1389_v55 = vld [vmem:[#allocation8 + $0x1f0] sm:$0xff] }
 0x3eb   : > { %1459 = vmatprep.subr.mxu1 %v1354_v57  ;;  %v1388_v57 = vld [vmem:[#allocation8 + $0x1e8] sm:$0xff] }
 0x3ec   : > { %1460 = vmatpush1.msra.mxu1 %v1353_v58  ;;  %v1387_v58 = vld [vmem:[#allocation8 + $0x1e0] sm:$0xff] }
 0x3ed   : > { %1461 = vmatprep.subr.mxu1 %v1352_v18  ;;  %v1450_v18 = vld [vmem:[#allocation8 + $0x3d8] sm:$0xff] }
 0x3ee   : > { %1462 = vmatpush1.msra.mxu1 %v1351_v60  ;;  %v1449_v60 = vld [vmem:[#allocation8 + $0x3d0] sm:$0xff] }
 0x3ef   : > { %1463 = vmatprep.subr.mxu1 %v1350_v62  ;;  %v1448_v62 = vld [vmem:[#allocation8 + $0x3c8] sm:$0xff] }
 0x3f0   : > { %1464 = vmatpush1.msra.mxu1 %v1349_v0  ;;  %v1447_v0 = vld [vmem:[#allocation8 + $0x3c0] sm:$0xff] }
 0x3f1   : > { %1465 = vmatprep.subr.mxu1 %v1348_v2  ;;  %v1446_v2 = vld [vmem:[#allocation8 + $0x3b8] sm:$0xff] }
 0x3f2   : > { %1466 = vmatpush1.msra.mxu1 %v1347_v5  ;;  %v1445_v5 = vld [vmem:[#allocation8 + $0x3b0] sm:$0xff] }
 0x3f3   : > { %1467 = vmatprep.subr.mxu1 %v1346_v7  ;;  %v1444_v7 = vld [vmem:[#allocation8 + $0x3a8] sm:$0xff] }
 0x3f4   : > { %1468 = vmatpush1.msra.mxu1 %v1345_v9  ;;  %v1443_v9 = vld [vmem:[#allocation8 + $0x3a0] sm:$0xff] }
 0x3f5   : > { %1469 = vmatprep.subr.mxu1 %v1344_v11 }
 0x3f6   : > { %1470 = vmatpush1.msra.mxu1 %v1343_v13 }
 0x3f7   : > { %1471 = vmatprep.subr.mxu1 %v1342_v15 }
 0x3f8   : > { %1472 = vmatpush1.msra.mxu1 %v1341_v20 }
 0x3f9   : > { %1473 = vmatprep.subr.mxu1 %v1340_v23  ;;  %v1379_v23 = vld [vmem:[#allocation8 + $0x1a0] sm:$0xff] }
 0x3fa   : > { %1474 = vmatpush1.msra.mxu1 %v1339_v25  ;;  %v1378_v25 = vld [vmem:[#allocation8 + $0x198] sm:$0xff] }
 0x3fb   : > { %1475 = vmatprep.subr.mxu1 %v1338_v29  ;;  %v1377_v29 = vld [vmem:[#allocation8 + $0x190] sm:$0xff] }
 0x3fc   : > { %1476 = vmatpush1.msra.mxu1 %v1337_v31  ;;  %v1376_v31 = vld [vmem:[#allocation8 + $0x188] sm:$0xff] }
 0x3fd   : > { %1477 = vmatprep.subr.mxu1 %v1336_v33 }
 0x3fe   : > { %1478 = vmatpush1.msra.mxu1 %v1335_v37  ;;  %v1437_v37 = vld [vmem:[#allocation8 + $0x370] sm:$0xff] }
 0x3ff   : > { %1479 = vmatprep.subr.mxu1 %v1334_v34  ;;  %v1436_v34 = vld [vmem:[#allocation8 + $0x368] sm:$0xff] }
 0x400   : > { %1480 = vmatpush1.msra.mxu1 %v1333_v42  ;;  %v1373_v42 = vld [vmem:[#allocation8 + $0x170] sm:$0xff] }
 0x4a7   : > { %v1176_v44 = vpop.f32.mrf.mxu1 }
 0x4a8   : > { %v1180_v45 = vmax.f32 %v1176_v44, 0.0  ;;  %v1332_v44 = vld [vmem:[#allocation8 + $0x28] sm:$0xff] }
 0x4a9   : > { %v1802_v35 = vpop.f32.mrf.mxu1  ;;  %1481 = vmatprep.subr.mxu1 %v1332_v44  ;;  %v1372_v44 = vld [vmem:[#allocation8 + $0x168] sm:$0xff] }
 0x4aa   : > { %1182 = vrot.lane.b32.xlu1 %v1180_v45, %s2072_s27  ;;  %v1331_v35 = vld [vmem:[#allocation8 + $0x20] sm:$0xff]  ;;  %s1789_s27 = sshll.u32 %s2178_s17, 8  ;;  %s2564_s17 = sand.u32 1, %s2053_s30  }
 0x4ab   : > { %1482 = vmatpush1.msra.mxu1 %v1331_v35  ;;  %v1371_v35 = vld [vmem:[#allocation8 + $0x160] sm:$0xff]  ;;  %s2473_s23 = scalar_lea.hbm %s2535_s14, %s1789_s27  ;;  %s2479_s1 = scalar_lea.sflag [#allocation5], %s2564_s17 }
 0x51c   : > { %v1183_v4 = vpop.permute.xlu1 %1182 }
 0x51d   : > { %v1185_v46 = vadd.f32 %v1183_v4, %v1180_v45  ;;  %v1395_v45 = vld [vmem:[#allocation8 + $0x220] sm:$0xff]  ;;  %v1394_v4 = vld [vmem:[#allocation8 + $0x218] sm:$0xff] }
 0x51f   : > { %1803 = vmatprep.subr.mxu0 %v1185_v46 }
 0x520   : > { %1804 = vmatpush3.msra.mxu0 %v1185_v46  ;;  %v1330_v46 = vld [vmem:[#allocation8 + $0x18] sm:$0xff] }
 0x521   : > { %1806 = vmatmul.mubr.msk.f32.vlgmr.msra.gmra.mxu0 %vm1188_vm12, %v1187_v47  ;;  %1526 = vmatprep.subr.mxu0 %v1422_v48  ;;  %v1393_v47 = vld [vmem:[#allocation8 + $0x210] sm:$0xff] }
 0x522   : > { %1527 = vmatpush1.msra.mxu0 %v1421_v49  ;;  %v1329_v48 = vld [vmem:[#allocation8 + $0x10] sm:$0xff]  ;;  %v1392_v49 = vld [vmem:[#allocation8 + $0x208] sm:$0xff]  ;;  %1483 = vmatprep.subr.mxu1 %v1330_v46  ;;  %v1370_v46 = vld [vmem:[#allocation8 + $0x158] sm:$0xff] }
 0x523   : > { %1528 = vmatprep.subr.mxu0 %v1420_v39  ;;  %v1391_v39 = vld [vmem:[#allocation8 + $0x200] sm:$0xff]  ;;  %1484 = vmatpush1.msra.mxu1 %v1329_v48  ;;  %v1369_v48 = vld [vmem:[#allocation8 + $0x150] sm:$0xff] }
 0x524   : > { %1529 = vmatpush1.msra.mxu0 %v1419_v52  ;;  %v1454_v52 = vld [vmem:[#allocation8 + $0x3f8] sm:$0xff]  ;;  %1485 = vmatprep.subr.mxu1 %v1328_v50  ;;  %v1368_v50 = vld [vmem:[#allocation8 + $0x148] sm:$0xff] }
 0x525   : > { %1530 = vmatprep.subr.mxu0 %v1418_v54  ;;  %v1453_v54 = vld [vmem:[#allocation8 + $0x3f0] sm:$0xff]  ;;  %1486 = vmatpush1.msra.mxu1 %v1327_v51  ;;  %v1367_v51 = vld [vmem:[#allocation8 + $0x140] sm:$0xff] }
 0x526   : > { %1531 = vmatpush1.msra.mxu0 %v1417_v56  ;;  %v1452_v56 = vld [vmem:[#allocation8 + $0x3e8] sm:$0xff]  ;;  %1487 = vmatprep.subr.mxu1 %v1390_v53  ;;  %v1366_v53 = vld [vmem:[#allocation8 + $0x138] sm:$0xff] }
 0x527   : > { %1532 = vmatprep.subr.mxu0 %v1416_v22  ;;  %v1451_v22 = vld [vmem:[#allocation8 + $0x3e0] sm:$0xff]  ;;  %1488 = vmatpush2.msra.mxu1 %v1389_v55  ;;  %v1365_v55 = vld [vmem:[#allocation8 + $0x130] sm:$0xff] }
 0x528   : > { %1533 = vmatpush1.msra.mxu0 %v1415_v59  ;;  %v1386_v59 = vld [vmem:[#allocation8 + $0x1d8] sm:$0xff]  ;;  %1489 = vmatprep.subr.mxu1 %v1388_v57  ;;  %v1364_v57 = vld [vmem:[#allocation8 + $0x128] sm:$0xff] }
 0x529   : > { %1534 = vmatprep.subr.mxu0 %v1414_v61  ;;  %v1385_v61 = vld [vmem:[#allocation8 + $0x1d0] sm:$0xff]  ;;  %1490 = vmatpush2.msra.mxu1 %v1387_v58  ;;  %v1363_v58 = vld [vmem:[#allocation8 + $0x120] sm:$0xff] }
 0x52a   : > { %1535 = vmatpush1.msra.mxu0 %v1413_v63  ;;  %v1384_v63 = vld [vmem:[#allocation8 + $0x1c8] sm:$0xff]  ;;  %1491 = vmatprep.subr.mxu1 %v1386_v59  ;;  %v1362_v59 = vld [vmem:[#allocation8 + $0x118] sm:$0xff] }
 0x52b   : > { %1536 = vmatprep.subr.mxu0 %v1412_v1  ;;  %v1383_v1 = vld [vmem:[#allocation8 + $0x1c0] sm:$0xff]  ;;  %1492 = vmatpush2.msra.mxu1 %v1385_v61  ;;  %v1361_v61 = vld [vmem:[#allocation8 + $0x110] sm:$0xff] }
 0x52c   : > { %1537 = vmatpush1.msra.mxu0 %v1411_v3  ;;  %v1382_v3 = vld [vmem:[#allocation8 + $0x1b8] sm:$0xff]  ;;  %1493 = vmatprep.subr.mxu1 %v1384_v63  ;;  %v1360_v63 = vld [vmem:[#allocation8 + $0x108] sm:$0xff] }
 0x52d   : > { %1538 = vmatprep.subr.mxu0 %v1410_v6  ;;  %v1381_v6 = vld [vmem:[#allocation8 + $0x1b0] sm:$0xff]  ;;  %1494 = vmatpush2.msra.mxu1 %v1383_v1 }
 0x52e   : > { %1539 = vmatpush1.msra.mxu0 %v1409_v8  ;;  %v1380_v8 = vld [vmem:[#allocation8 + $0x1a8] sm:$0xff]  ;;  %1495 = vmatprep.subr.mxu1 %v1382_v3 }
 0x52f   : > { %1540 = vmatprep.subr.mxu0 %v1408_v10  ;;  %1496 = vmatpush2.msra.mxu1 %v1381_v6  ;;  %v1442_v10 = vld [vmem:[#allocation8 + $0x398] sm:$0xff] }
 0x530   : > { %1541 = vmatpush1.msra.mxu0 %v1407_v12  ;;  %1497 = vmatprep.subr.mxu1 %v1380_v8 }
 0x531   : > { %1542 = vmatprep.subr.mxu0 %v1406_v14  ;;  %1498 = vmatpush2.msra.mxu1 %v1379_v23 }
 0x532   : > { %1543 = vmatpush1.msra.mxu0 %v1405_v16  ;;  %1499 = vmatprep.subr.mxu1 %v1378_v25 }
 0x533   : > { %1544 = vmatprep.subr.mxu0 %v1404_v21  ;;  %1500 = vmatpush2.msra.mxu1 %v1377_v29 }
 0x534   : > { %1545 = vmatpush1.msra.mxu0 %v1403_v24  ;;  %v1441_v24 = vld [vmem:[#allocation8 + $0x390] sm:$0xff]  ;;  %1501 = vmatprep.subr.mxu1 %v1376_v31 }
 0x535   : > { %1546 = vmatprep.subr.mxu0 %v1402_v28  ;;  %v1440_v28 = vld [vmem:[#allocation8 + $0x388] sm:$0xff] }
 0x536   : > { %1547 = vmatpush1.msra.mxu0 %v1401_v30  ;;  %v1439_v30 = vld [vmem:[#allocation8 + $0x380] sm:$0xff] }
 0x537   : > { %1548 = vmatprep.subr.mxu0 %v1400_v32  ;;  %v1438_v32 = vld [vmem:[#allocation8 + $0x378] sm:$0xff] }
 0x538   : > { %1549 = vmatpush1.msra.mxu0 %v1399_v36  ;;  %v1375_v36 = vld [vmem:[#allocation8 + $0x180] sm:$0xff] }
 0x539   : > { %1550 = vmatprep.subr.mxu0 %v1398_v40  ;;  %1502 = vmatpush2.msra.mxu1 %v1375_v36  ;;  %v1374_v40 = vld [vmem:[#allocation8 + $0x178] sm:$0xff] }
 0x53a   : > { %1551 = vmatpush1.msra.mxu0 %v1397_v41  ;;  %1503 = vmatprep.subr.mxu1 %v1374_v40 }
 0x53b   : > { %1552 = vmatprep.subr.mxu0 %v1396_v43  ;;  %v1435_v43 = vld [vmem:[#allocation8 + $0x360] sm:$0xff]  ;;  %1504 = vmatpush2.msra.mxu1 %v1373_v42 }
 0x53c   : > { %1553 = vmatpush1.msra.mxu0 %v1395_v45  ;;  %v1434_v45 = vld [vmem:[#allocation8 + $0x358] sm:$0xff]  ;;  %1505 = vmatprep.subr.mxu1 %v1372_v44 }
 0x53d   : > { %1554 = vmatprep.subr.mxu0 %v1394_v4  ;;  %v1433_v4 = vld [vmem:[#allocation8 + $0x350] sm:$0xff]  ;;  %1506 = vmatpush2.msra.mxu1 %v1371_v35 }
 0x53e   : > { %1555 = vmatpush1.msra.mxu0 %v1393_v47  ;;  %v1432_v47 = vld [vmem:[#allocation8 + $0x348] sm:$0xff]  ;;  %1507 = vmatprep.subr.mxu1 %v1370_v46 }
 0x53f   : > { %1556 = vmatprep.subr.mxu0 %v1392_v49  ;;  %v1431_v49 = vld [vmem:[#allocation8 + $0x340] sm:$0xff]  ;;  %1508 = vmatpush2.msra.mxu1 %v1369_v48 }
 0x540   : > { %1557 = vmatpush1.msra.mxu0 %v1391_v39  ;;  %v1430_v39 = vld [vmem:[#allocation8 + $0x338] sm:$0xff]  ;;  %1509 = vmatprep.subr.mxu1 %v1368_v50 }
 0x541   : > { %1558 = vmatprep.subr.mxu0 %v1454_v52  ;;  %v1429_v52 = vld [vmem:[#allocation8 + $0x330] sm:$0xff]  ;;  %1510 = vmatpush2.msra.mxu1 %v1367_v51 }
 0x542   : > { %1559 = vmatpush2.msra.mxu0 %v1453_v54  ;;  %v1428_v54 = vld [vmem:[#allocation8 + $0x328] sm:$0xff]  ;;  %1511 = vmatprep.subr.mxu1 %v1366_v53 }
 0x543   : > { %1560 = vmatprep.subr.mxu0 %v1452_v56  ;;  %v1427_v56 = vld [vmem:[#allocation8 + $0x320] sm:$0xff]  ;;  %1512 = vmatpush2.msra.mxu1 %v1365_v55 }
 0x544   : > { %1561 = vmatpush2.msra.mxu0 %v1451_v22  ;;  %v1426_v22 = vld [vmem:[#allocation8 + $0x318] sm:$0xff]  ;;  %1513 = vmatprep.subr.mxu1 %v1364_v57 }
 0x545   : > { %1562 = vmatprep.subr.mxu0 %v1450_v18  ;;  %v1425_v18 = vld [vmem:[#allocation8 + $0x310] sm:$0xff]  ;;  %1514 = vmatpush2.msra.mxu1 %v1363_v58 }
 0x546   : > { %1563 = vmatpush2.msra.mxu0 %v1449_v60  ;;  %v1424_v60 = vld [vmem:[#allocation8 + $0x308] sm:$0xff]  ;;  %1515 = vmatprep.subr.mxu1 %v1362_v59 }
 0x547   : > { %1564 = vmatprep.subr.mxu0 %v1448_v62  ;;  %v1423_v62 = vld [vmem:[#allocation8 + $0x300] sm:$0xff]  ;;  %1516 = vmatpush2.msra.mxu1 %v1361_v61 }
 0x548   : > { %1565 = vmatpush2.msra.mxu0 %v1447_v0  ;;  %v1359_v0 = vld [vmem:[#allocation8 + $0x100] sm:$0xff]  ;;  %1517 = vmatprep.subr.mxu1 %v1360_v63 }
 0x549   : > { %1566 = vmatprep.subr.mxu0 %v1446_v2  ;;  %1518 = vmatpush2.msra.mxu1 %v1359_v0  ;;  %v1913_v0 = vld [vmem:[%s2274_s2 + $0x8] sm:$0xff] }
 0x54a   : > { %1567 = vmatpush2.msra.mxu0 %v1445_v5 }
 0x54b   : > { %1568 = vmatprep.subr.mxu0 %v1444_v7 }
 0x54c   : > { %1569 = vmatpush2.msra.mxu0 %v1443_v9 }
 0x54d   : > { %1570 = vmatprep.subr.mxu0 %v1442_v10 }
 0x54e   : > { %1571 = vmatpush2.msra.mxu0 %v1441_v24 }
 0x54f   : > { %1572 = vmatprep.subr.mxu0 %v1440_v28 }
 0x550   : > { %1573 = vmatpush2.msra.mxu0 %v1439_v30 }
 0x551   : > { %1574 = vmatprep.subr.mxu0 %v1438_v32 }
 0x552   : > { %1575 = vmatpush2.msra.mxu0 %v1437_v37 }
 0x553   : > { %1576 = vmatprep.subr.mxu0 %v1436_v34 }
 0x554   : > { %1577 = vmatpush2.msra.mxu0 %v1435_v43 }
 0x555   : > { %1578 = vmatprep.subr.mxu0 %v1434_v45 }
 0x556   : > { %1579 = vmatpush2.msra.mxu0 %v1433_v4 }
 0x557   : > { %1580 = vmatprep.subr.mxu0 %v1432_v47 }
 0x558   : > { %1581 = vmatpush2.msra.mxu0 %v1431_v49 }
 0x559   : > { %1582 = vmatprep.subr.mxu0 %v1430_v39 }
 0x55a   : > { %1583 = vmatpush2.msra.mxu0 %v1429_v52 }
 0x55b   : > { %1584 = vmatprep.subr.mxu0 %v1428_v54 }
 0x55c   : > { %1585 = vmatpush2.msra.mxu0 %v1427_v56 }
 0x55d   : > { %1586 = vmatprep.subr.mxu0 %v1426_v22  ;;  %v1911_v22 = vld [vmem:[%s2274_s2] sm:$0xff] }
 0x55e   : > { %1587 = vmatpush2.msra.mxu0 %v1425_v18  ;;  %v1912_v18 = vld [vmem:[%s2274_s2 + $0x10] sm:$0xff] }
 0x55f   : > { %1588 = vmatprep.subr.mxu0 %v1424_v60 }
 0x560   : > { %1589 = vmatpush2.msra.mxu0 %v1423_v62 }
 0x5e1   : > { %v1807_v11 = vpop.f32.mrf.mxu0 }
 0x5e2   : > { %v1780_v12 = vmul.f32 -1.442695, %v1807_v11 }
 0x5e3   : > { %v1261_v13 = vpop.f32.mrf.mxu0 }
 0x5e4   : > { %1895 = vpow2.f32 %v1780_v12  ;;  %v1779_v14 = vmul.f32 -1.442695, %v1261_v13 }
 0x5e6   : > { %1897 = vpow2.f32 %v1779_v14 }
 0x5f1   : > { %v1896_v15 = vpop.eup %1895 }
 0x5f2   : > { %v1277_v16 = vadd.f32 1.0, %v1896_v15 }
 0x5f3   : > { %v1898_v20 = vpop.eup %1897 }
 0x5f4   : > { %1899 = vrcp.f32 %v1277_v16  ;;  %v1276_v21 = vadd.f32 1.0, %v1898_v20 }
 0x5f6   : > { %1901 = vrcp.f32 %v1276_v21 }
 0x601   : > { %v1900_v33 = vpop.eup %1899 }
 0x602   : > { %1289 = vperm.xlu1 %1894, %v1900_v33  }
 0x603   : > { %v1902_v41 = vpop.eup %1901 }
 0x604   : > { %1284 = vperm.xlu0 %1893, %v1902_v41  }
 0x67d   : > { %v1290_v1 = vpop.permute.xlu1 %1289 }
 0x67e   : > { %v1294_v3 = vmul.f32 %v1290_v1, %v2428_v26  ;;  %v2455_v5 = vmul.f32 %v1290_v1, %v2430_v27 }
 0x67f   : > { %v1285_v2 = vpop.permute.xlu0 %1284 }
 0x680   : > { %v1292_v6 = vmul.f32 %v1285_v2, %v2422_v17  ;;  %v1293_v7 = vmul.f32 %v1285_v2, %v2424_v19  ;;  %v1914_v2 = vld [vmem:[%s2274_s2 + $0x18] sm:$0xff]  ;;  %s1993_s2 = scalar_lea.vmem %s2475_s20, 512 }
 0x681   : > { %p1994_p4 = scmp.ne.s32.totalorder %s2475_s20, %s1993_s2  ;;  %p2001_p5 = scmp.lt.s32.totalorder %s1999_s22, %s1993_s2 }
 0x682   : > { %v1296_v8 = vadd.f32 %v1294_v3, %v1292_v6  ;;  %v1303_v9 = vadd.f32 %v2455_v5, %v1293_v7  ;;  %v1313_v10 = vmax.f32 %v1292_v6, %v1294_v3  ;;  %v1320_v11 = vmax.f32 %v1293_v7, %v2455_v5 }
 0x683   : > { %p1995_p11 = pnand %p1994_p4, %p2565_p10  ;;  %p2002_p12 = por %p2001_p5, %p2000_p6 }
 0x684   : > { %v1297_v12 = vrot.slane %v1296_v8, 4  ;;  %v1304_v13 = vrot.slane %v1303_v9, 4  ;;  %v1314_v14 = vrot.slane %v1313_v10, 4  ;;  %v1321_v15 = vrot.slane %v1320_v11, 4 }
 0x685   : > { %p1996_p7 = pneg %p1995_p11 }
 0x686   : > { %v1298_v16 = vadd.f32 %v1297_v12, %v1296_v8  ;;  %v1305_v20 = vadd.f32 %v1304_v13, %v1303_v9  ;;  %v1315_v26 = vmax.f32 %v1313_v10, %v1314_v14  ;;  %v1322_v21 = vmax.f32 %v1320_v11, %v1321_v15 }
 0x687   : > { %p2003_p1 = pnand %p2002_p12, %p1996_p7 }
 0x688   : > { %v1299_v27 = vrot.slane %v1298_v16, 2  ;;  %v1316_v23 = vrot.slane %v1315_v26, 2  ;;  %v1323_v24 = vrot.slane %v1322_v21, 2  ;;  %v1306_v17 = vrot.slane %v1305_v20, 2 }
 0x68a   : > { %v1300_v25 = vadd.f32 %v1299_v27, %v1298_v16  ;;  %v1317_v19 = vmax.f32 %v1315_v26, %v1316_v23  ;;  %v1324_v28 = vmax.f32 %v1322_v21, %v1323_v24  ;;  %v1307_v29 = vadd.f32 %v1306_v17, %v1305_v20 }
 0x68c   : > { %v1325_v30 = vrot.slane %v1324_v28, 1  ;;  %v1318_v31 = vrot.slane %v1317_v19, 1  ;;  %v1308_v32 = vrot.slane %v1307_v29, 1  ;;  %v1301_v33 = vrot.slane %v1300_v25, 1 }
 0x68e   : > { %v1326_v36 = vmax.f32 %v1324_v28, %v1325_v30  ;;  %v1319_v37 = vmax.f32 %v1317_v19, %v1318_v31  ;;  %v1309_v40 = vadd.f32 %v1308_v32, %v1307_v29  ;;  %v1302_v34 = vadd.f32 %v1301_v33, %v1300_v25 }
 0x690   : > { %1590 = vmatprep.mubr.f32.mxu0 %v1326_v36  ;;  %v1312_v41 = vmul.f32 0.0625, %v1309_v40  ;;  %v1311_v42 = vmul.f32 0.0625, %v1302_v34 }
 0x691   : > { %1591 = vmatmul.mubr.f32.vlgmr.msra.gmra.mxu0 %v1319_v37 }
 0x692   : > { %1519 = vmatprep.mubr.f32.mxu1 %v1312_v41 }
 0x693   : > { %1520 = vmatmul.mubr.f32.vlgmr.msra.gmra.mxu1 %v1311_v42 }
 0x751   : > { %v1592_v43 = vpop.f32.mrf.mxu0 }
 0x753   : > { %v1521_v44 = vpop.f32.mrf.mxu1  ;;  %v1594_v35 = vpop.f32.mrf.mxu0 }
 0x754   : > { %v1593_v45 = vadd.f32 %v1592_v43, %v1521_v44 }
 0x755   : > { %v1523_v4 = vpop.f32.mrf.mxu1 }
 0x756   : > { %v1781_v46 = vmul.f32 -1.442695, %v1593_v45  ;;  %v1595_v47 = vadd.f32 %v1594_v35, %v1523_v4 }
 0x758   : > { %1903 = vpow2.f32 %v1781_v46  ;;  %v1782_v48 = vmul.f32 -1.442695, %v1595_v47 }
 0x75a   : > { %1905 = vpow2.f32 %v1782_v48 }
 0x765   : > { %v1904_v49 = vpop.eup %1903 }
 0x766   : > { %v1603_v50 = vadd.f32 1.0, %v1904_v49 }
 0x767   : > { %v1906_v39 = vpop.eup %1905 }
 0x768   : > { %1907 = vrcp.f32 %v1603_v50  ;;  %v1604_v51 = vadd.f32 1.0, %v1906_v39 }
 0x76a   : > { %1909 = vrcp.f32 %v1604_v51 }
 0x775   : > { %v1908_v52 = vpop.eup %1907 }
 0x776   : > { %v1612_v53 = vrot.slane %v1908_v52, %v2345_v38 }
 0x777   : > { %v1910_v54 = vpop.eup %1909 }
 0x778   : > { %v1617_v55 = vmul.f32 %v1612_v53, %v1292_v6  ;;  %v1619_v56 = vmul.f32 %v1612_v53, %v1294_v3  ;;  %v1616_v57 = vrot.slane %v1910_v54, %v2345_v38 }
 0x77a   : > { %v1621_v58 = vadd.f32 %v1911_v22, %v1617_v55  ;;  %v1623_v59 = vadd.f32 %v1912_v18, %v1619_v56  ;;  %v1618_v60 = vmul.f32 %v1616_v57, %v1293_v7  ;;  %v1620_v61 = vmul.f32 %v1616_v57, %v2455_v5 }
 0x77c   : > { %v1625_v62 = vmax.f32 %v1621_v58, 0.0  ;;  %v1627_v63 = vmax.f32 %v1623_v59, 0.0  ;;  %v1622_v1 = vadd.f32 %v1913_v0, %v1618_v60  ;;  %v1624_v3 = vadd.f32 %v1914_v2, %v1620_v61 }
 0x77e   : > { %1629 = vst [vmem:[%s531_s29] sm:$0xff] %v1625_v62  ;;  %1631 = vst [vmem:[%s531_s29 + $0x10] sm:$0xff] %v1627_v63  ;;  %v1626_v38 = vmax.f32 %v1622_v1, 0.0  ;;  %v1628_v5 = vmax.f32 %v1624_v3, 0.0 }
 0x780   : > { %1630 = vst [vmem:[%s531_s29 + $0x8] sm:$0xff] %v1626_v38  ;;  %1632 = vst [vmem:[%s531_s29 + $0x18] sm:$0xff] %v1628_v5 }
 0x781   : > { %2006 = shalt.err (!%p2003_p1)
}
 0x782   : > { %s2007_s25 = scalar_lea.hbm %s2473_s23, 512  ;;  %s2011_s29 = scalar_lea.hbm %s2535_s14, 1024 }
 0x783   : > { %p2008_p0 = scmp.ne.s32.totalorder %s2473_s23, %s2007_s25  ;;  %p2012_p2 = scmp.lt.s32.totalorder %s2473_s23, %s2535_s14 }
 0x784   : > { %p2013_p3 = scmp.lt.s32.totalorder %s2011_s29, %s2007_s25 }
 0x785   : > { %p2009_p9 = pnand %p2008_p0, %p2565_p10 }
 0x786   : > { %p2014_p4 = por %p2013_p3, %p2012_p2 }
 0x787   : > { %p2010_p13 = pneg %p2009_p9 }
 0x789   : > { %p2015_p11 = pnand %p2014_p4, %p2010_p13 }
 0x78b   : > { %2018 = shalt.err (!%p2015_p11)
}
 0x78c   : > { %s2080_s17 = smov 256   ;;  %s2081_s2 = smov 512  }
 0x78d   : > { %s2566_s19 = smov 16  }
 0x78e   : > { %1820 = dma.vmem_to_hbm [thread:$0]  (%p2565_p10), %s2475_s20, 512, %s2473_s23, %s2479_s1, %s2080_s17, %s2081_s2, %s2566_s19  }
 0x78f PF: > { %s2567_s28 = sld [smem:[#allocation13_spill]] }
 0x790   : > { %s2568_s22 = sld [smem:[#allocation16_spill]] }
 0x795   : > { %s1662_s18 = sand.u32 1, %s2567_s28  }
 0x796   : > { %p2569_p7 = scmp.ne.s32.totalorder %s2568_s22, 0  ;;  %s1663_s25 = scalar_lea.sflag [#allocation5], %s1662_s18 }
 0x798   : > { %p1833_p6 = pnand %p1751_p8, %p2569_p7 }
 0x79a   : > { %p1834_p5 = pneg %p1833_p6 }
 0x79c   : > { %2044 = dma.done.wait (%p1834_p5), %s1663_s25, 512  }
 0x79d   : > { %2046 = vsyncadd (%p1834_p5), %s1663_s25, 4294966784  ;;  %s2570_s16 = sld [smem:[#allocation14_spill]]  ;;  %s2572_s29 = smov %s2053_s30 }
 0x79e   : > { %s2571_s27 = sld [smem:[#allocation15_spill]]  ;;  %s2573_s30 = smov %s2057_s15 }
 0x7a3   : > { %p26_p12 = scmp.ge.s32.totalorder %s2570_s16, 4  }
 0x7a4   : > { %s2574_s15 = smov %s2571_s27 }
 0x7a5   :  { %28 = sbr.rel (!%p26_p12) target bundleno = 8 (0x8), region = 159 }
 0x7aa   :  { %1668 = vsyncpa [#allocation4], 1 }
 0x7ab   :  { %1670 = vsyncpa [#allocation4 + $0x1], 1 }
 0x7ac   :  { %1671 = vsyncpa [#allocation7], 1 }
 0x7ad   :  { %1672 = vsyncpa [#allocation5], 1 }
 0x7ae   :  { %1674 = vsyncpa [#allocation5 + $0x1], 1 }

</bundles_post_ra>
